<compile_context>
chip_gen: v7x
topology: tpu7x:2x2x1
jax: 0.10.0
libtpu: 0.0.40
codegen_flags: <defaults>
</compile_context>

<pallas_src>
import functools

import jax
import jax.numpy as jnp
from jax import lax
from jax.experimental import pallas as pl
from jax.experimental.pallas import tpu as pltpu

EPS = 1e-5  # BatchNorm2d default


# ----------------------------- pass 1 kernel ---------------------------------
def _dw_conv_kernel(w_sm, x_ref, h_ref, stat_ref, *, cin, hh, ww, kk):
    """Depthwise KxK conv (stride 1, 'same' padding) + BN1 partial stats.

    w_sm    : SMEM (cin, kk*kk)           per-channel tap weights (scalar table)
    x_ref   : VMEM (1, cin, hh+2p, ww+2p) one zero-padded image (NCHW plane set)
    h_ref   : VMEM (1, cin, hh, ww)       depthwise conv output for this image
    stat_ref: VMEM (2, cin, hh, ww)       resident accumulator: [sum, sum_sq]
    """
    n = pl.program_id(0)

    @pl.when(n == 0)
    def _init():
        stat_ref[...] = jnp.zeros_like(stat_ref)

    for c in range(cin):
        acc = w_sm[c, 0] * x_ref[0, c, 0:hh, 0:ww]
        for k in range(1, kk * kk):
            kh, kw = k // kk, k % kk
            acc = acc + w_sm[c, k] * x_ref[0, c, kh:kh + hh, kw:kw + ww]
        h_ref[0, c] = acc
        stat_ref[0, c] += acc
        stat_ref[1, c] += acc * acc


# ----------------------------- pass 2 kernel ---------------------------------
def _pw_stats_kernel(h_ref, a1_ref, c1_ref, w2_ref, s_ref):
    """BN1 affine + ReLU6 + 1x1 conv, accumulating BN2 sum / sum_sq only.

    h_ref : (1, Cin, PT)   depthwise output tile (positions on the lane axis)
    a1/c1 : (Cin, 1)       folded BN1 scale / shift
    w2    : (Cout, Cin)    pointwise conv weight
    s_ref : (2, Cout, PT)  resident accumulator: [sum, sum_sq] (lane-partial)
    """
    n = pl.program_id(0)
    p = pl.program_id(1)

    @pl.when(jnp.logical_and(n == 0, p == 0))
    def _init():
        s_ref[...] = jnp.zeros_like(s_ref)

    g = jnp.clip(h_ref[0] * a1_ref[...] + c1_ref[...], 0.0, 6.0)
    z = jnp.dot(w2_ref[...], g, preferred_element_type=jnp.float32)  # (Cout, PT)
    s_ref[0] += z
    s_ref[1] += z * z


# ----------------------------- pass 3 kernel ---------------------------------
def _pw_final_kernel(h_ref, a1_ref, c1_ref, w2_ref, a2_ref, c2_ref, y_ref):
    """BN1 affine + ReLU6 + 1x1 conv + BN2 affine, lane-dense (Cout, PT) store."""
    g = jnp.clip(h_ref[0] * a1_ref[...] + c1_ref[...], 0.0, 6.0)
    z = jnp.dot(w2_ref[...], g, preferred_element_type=jnp.float32)  # (Cout, PT)
    y_ref[0] = z * a2_ref[...] + c2_ref[...]


def _pick_pos_tile(hw):
    """Largest lane-dense (multiple of 128) tile of spatial positions dividing H*W."""
    for cand in (2048, 1024, 512, 256, 128):
        if hw % cand == 0:
            return cand
    return hw  # falls back to full extent (still a legal block)


_VMEM_LIMIT = 32 * 1024 * 1024  # fits v5e/v6e/v7x scoped VMEM budgets


# ------------------------------- wrapper --------------------------------------
def dsconv_forward(x, w_dw, g1, b1, w_pw, g2, b2):
    """DSConv forward (training-mode BN), NCHW float32 in -> NCHW float32 out.

    x    : (N, Cin, H, W)
    w_dw : (Cin, 1, K, K)   depthwise conv weight (PyTorch layout, groups=Cin)
    w_pw : (Cout, Cin, 1, 1) pointwise conv weight
    g1,b1: (Cin,)  BN1 affine;  g2,b2: (Cout,) BN2 affine
    """
    N, Cin, H, W = x.shape
    K = w_dw.shape[-1]
    P = K // 2
    Cout = w_pw.shape[0]
    HW = H * W
    count = float(N * H * W)

    x = x.astype(jnp.float32)
    xpad = jnp.pad(x, ((0, 0), (0, 0), (P, P), (P, P)))          # only spatial zero-pad
    wdw2d = w_dw.reshape(Cin, K * K).astype(jnp.float32)          # SMEM scalar table
    w2 = w_pw.reshape(Cout, Cin).astype(jnp.float32)

    # ---------------- pass 1: depthwise conv + BN1 partial stats ----------------
    h, stats1 = pl.pallas_call(
        functools.partial(_dw_conv_kernel, cin=Cin, hh=H, ww=W, kk=K),
        grid=(N,),
        in_specs=[
            pl.BlockSpec(memory_space=pltpu.MemorySpace.SMEM),                 # dw taps
            pl.BlockSpec((1, Cin, H + 2 * P, W + 2 * P), lambda n: (n, 0, 0, 0)),
        ],
        out_specs=[
            pl.BlockSpec((1, Cin, H, W), lambda n: (n, 0, 0, 0)),              # h
            pl.BlockSpec((2, Cin, H, W), lambda n: (0, 0, 0, 0)),              # resident acc
        ],
        out_shape=[
            jax.ShapeDtypeStruct((N, Cin, H, W), jnp.float32),
            jax.ShapeDtypeStruct((2, Cin, H, W), jnp.float32),
        ],
        compiler_params=pltpu.CompilerParams(
            dimension_semantics=("arbitrary",),        # accumulator across images
            vmem_limit_bytes=_VMEM_LIMIT,
        ),
        cost_estimate=pl.CostEstimate(
            flops=2 * N * Cin * H * W * K * K,
            transcendentals=0,
            bytes_accessed=4 * (xpad.size + N * Cin * H * W + 2 * Cin * H * W),
        ),
    )(wdw2d, xpad)

    # BN1 global moments (training-mode, biased variance) -> folded affine.
    sum1 = stats1[0].sum(axis=(1, 2))
    sumsq1 = stats1[1].sum(axis=(1, 2))
    mean1 = sum1 / count
    var1 = jnp.maximum(sumsq1 / count - mean1 * mean1, 0.0)
    inv1 = lax.rsqrt(var1 + EPS)
    a1 = (g1 * inv1).reshape(Cin, 1).astype(jnp.float32)
    c1 = (b1 - mean1 * g1 * inv1).reshape(Cin, 1).astype(jnp.float32)

    # ---------------- pass 2: pointwise conv -> BN2 partial stats ---------------
    PT = _pick_pos_tile(HW)
    h2 = h.reshape(N, Cin, HW)                    # contiguous reshape (free)
    grid_bc = (N, HW // PT)

    stats2 = pl.pallas_call(
        _pw_stats_kernel,
        grid=grid_bc,
        in_specs=[
            pl.BlockSpec((1, Cin, PT), lambda n, p: (n, 0, p)),
            pl.BlockSpec((Cin, 1), lambda n, p: (0, 0)),
            pl.BlockSpec((Cin, 1), lambda n, p: (0, 0)),
            pl.BlockSpec((Cout, Cin), lambda n, p: (0, 0)),
        ],
        out_specs=pl.BlockSpec((2, Cout, PT), lambda n, p: (0, 0, 0)),
        out_shape=jax.ShapeDtypeStruct((2, Cout, PT), jnp.float32),
        compiler_params=pltpu.CompilerParams(
            dimension_semantics=("arbitrary", "arbitrary"),   # resident accumulator
            vmem_limit_bytes=_VMEM_LIMIT,
        ),
        cost_estimate=pl.CostEstimate(
            flops=N * HW * (3 * Cin + 2 * Cin * Cout + 2 * Cout),
            transcendentals=0,
            bytes_accessed=4 * (N * Cin * HW + 2 * Cout * PT),
        ),
    )(h2, a1, c1, w2)

    sum2 = stats2[0].sum(axis=1)
    sumsq2 = stats2[1].sum(axis=1)
    mean2 = sum2 / count
    var2 = jnp.maximum(sumsq2 / count - mean2 * mean2, 0.0)
    inv2 = lax.rsqrt(var2 + EPS)
    a2 = (g2 * inv2).reshape(Cout, 1).astype(jnp.float32)
    c2 = (b2 - mean2 * g2 * inv2).reshape(Cout, 1).astype(jnp.float32)

    # ---------------- pass 3: final output (lane-dense stores) ------------------
    y = pl.pallas_call(
        _pw_final_kernel,
        grid=grid_bc,
        in_specs=[
            pl.BlockSpec((1, Cin, PT), lambda n, p: (n, 0, p)),
            pl.BlockSpec((Cin, 1), lambda n, p: (0, 0)),
            pl.BlockSpec((Cin, 1), lambda n, p: (0, 0)),
            pl.BlockSpec((Cout, Cin), lambda n, p: (0, 0)),
            pl.BlockSpec((Cout, 1), lambda n, p: (0, 0)),
            pl.BlockSpec((Cout, 1), lambda n, p: (0, 0)),
        ],
        out_specs=pl.BlockSpec((1, Cout, PT), lambda n, p: (n, 0, p)),
        out_shape=jax.ShapeDtypeStruct((N, Cout, HW), jnp.float32),
        compiler_params=pltpu.CompilerParams(
            dimension_semantics=("parallel", "parallel"),     # no cross-step state
            vmem_limit_bytes=_VMEM_LIMIT,
        ),
        cost_estimate=pl.CostEstimate(
            flops=N * HW * (3 * Cin + 2 * Cin * Cout + 2 * Cout),
            transcendentals=0,
            bytes_accessed=4 * (N * Cin * HW + N * Cout * HW),
        ),
    )(h2, a1, c1, w2, a2, c2)

    return y.reshape(N, Cout, H, W)               # NCHW, contiguous (no transpose)


# ----------------------------- pure-JAX reference -----------------------------
def reference(x, w_dw, g1, b1, w_pw, g2, b2):
    Cin = x.shape[1]
    y = lax.conv_general_dilated(x, w_dw, (1, 1), ((1, 1), (1, 1)),
                                 dimension_numbers=("NCHW", "OIHW", "NCHW"),
                                 feature_group_count=Cin)
    m = y.mean(axis=(0, 2, 3), keepdims=True)
    v = ((y - m) ** 2).mean(axis=(0, 2, 3), keepdims=True)
    y = (y - m) * lax.rsqrt(v + EPS) * g1.reshape(1, -1, 1, 1) + b1.reshape(1, -1, 1, 1)
    y = jnp.clip(y, 0.0, 6.0)
    z = lax.conv_general_dilated(y, w_pw, (1, 1), ((0, 0), (0, 0)),
                                 dimension_numbers=("NCHW", "OIHW", "NCHW"))
    m2 = z.mean(axis=(0, 2, 3), keepdims=True)
    v2 = ((z - m2) ** 2).mean(axis=(0, 2, 3), keepdims=True)
    return (z - m2) * lax.rsqrt(v2 + EPS) * g2.reshape(1, -1, 1, 1) + b2.reshape(1, -1, 1, 1)


if __name__ == "__main__":
    # DSConv(in_channels=4, out_channels=8, kernel_size=3, stride=1)
    N, Cin, H, W = 2, 4, 16, 16
    Cout = 8
    K = 3

    key = jax.random.PRNGKey(0)
    kx, kw1, kw2, kg1, kb1, kg2, kb2 = jax.random.split(key, 7)

    x = jax.random.normal(kx, (N, Cin, H, W), dtype=jnp.float32)
    w_dw = jax.random.normal(kw1, (Cin, 1, K, K), dtype=jnp.float32) * 0.3   # groups=Cin
    w_pw = jax.random.normal(kw2, (Cout, Cin, 1, 1), dtype=jnp.float32) * 0.3
    g1 = 1.0 + 0.1 * jax.random.normal(kg1, (Cin,), dtype=jnp.float32)
    b1 = 0.1 * jax.random.normal(kb1, (Cin,), dtype=jnp.float32)
    g2 = 1.0 + 0.1 * jax.random.normal(kg2, (Cout,), dtype=jnp.float32)
    b2 = 0.1 * jax.random.normal(kb2, (Cout,), dtype=jnp.float32)

    fwd = jax.jit(dsconv_forward)
    out = jax.block_until_ready(fwd(x, w_dw, g1, b1, w_pw, g2, b2))
    ref = jax.block_until_ready(reference(x, w_dw, g1, b1, w_pw, g2, b2))

    assert out.shape == (N, Cout, H, W), out.shape
    max_err = float(jnp.max(jnp.abs(out - ref)))
    assert jnp.allclose(out, ref, atol=1e-2, rtol=1e-2), max_err

    print("KERNEL_OK")
</pallas_src>

<mosaic_0001>
module attributes {stable_mosaic.version = 11 : i64} {
  func.func @_pw_stats_kernel(%arg0: i32, %arg1: i32, %arg2: memref<1x4x256xf32, #tpu.memory_space<vmem>>, %arg3: memref<4x1xf32, #tpu.memory_space<vmem>>, %arg4: memref<4x1xf32, #tpu.memory_space<vmem>>, %arg5: memref<8x4xf32, #tpu.memory_space<vmem>>, %arg6: memref<2x8x256xf32, #tpu.memory_space<vmem>>) attributes {dimension_semantics = [#tpu.dimension_semantics<arbitrary>, #tpu.dimension_semantics<arbitrary>], iteration_bounds = array<i64: 2, 1>, scalar_prefetch = 0 : i64, scratch_operands = 0 : i64, tpu.core_type = #tpu.core_type<tc>, window_params = [{transform_indices = @transform_0, window_bounds = array<i64: 1, 4, 256>}, {pipeline_mode = #tpu.pipeline_mode<synchronous>, transform_indices = @transform_1, window_bounds = array<i64: 4, 1>}, {pipeline_mode = #tpu.pipeline_mode<synchronous>, transform_indices = @transform_2, window_bounds = array<i64: 4, 1>}, {pipeline_mode = #tpu.pipeline_mode<synchronous>, transform_indices = @transform_3, window_bounds = array<i64: 8, 4>}, {pipeline_mode = #tpu.pipeline_mode<synchronous>, transform_indices = @transform_4, window_bounds = array<i64: 2, 8, 256>}]} {
    %c0_i32 = arith.constant 0 : i32
    %0 = arith.cmpi eq, %arg0, %c0_i32 : i32
    %c0_i32_0 = arith.constant 0 : i32
    %1 = arith.cmpi eq, %arg1, %c0_i32_0 : i32
    %2 = arith.andi %0, %1 : i1
    %3 = arith.extui %2 : i1 to i32
    %c0_i32_1 = arith.constant 0 : i32
    %4 = arith.cmpi ne, %3, %c0_i32_1 : i32
    scf.if %4 {
      %cst_23 = arith.constant 0.000000e+00 : f32
      %32 = vector.broadcast %cst_23 : f32 to vector<2x8x256xf32>
      %c0_24 = arith.constant 0 : index
      %c0_25 = arith.constant 0 : index
      %c0_26 = arith.constant 0 : index
      %33 = vector.load %arg6[%c0_24, %c0_25, %c0_26] : memref<2x8x256xf32, #tpu.memory_space<vmem>>, vector<2x8x256xf32>
      tpu.vector_store %arg6[%c0_24, %c0_25, %c0_26], %32 {strides = array<i32>} : memref<2x8x256xf32, #tpu.memory_space<vmem>>, vector<2x8x256xf32>,
    } else {
    }
    %c0 = arith.constant 0 : index
    %c0_2 = arith.constant 0 : index
    %c0_3 = arith.constant 0 : index
    %5 = vector.load %arg2[%c0, %c0_2, %c0_3] : memref<1x4x256xf32, #tpu.memory_space<vmem>>, vector<1x4x256xf32>
    %6 = vector.shape_cast %5 : vector<1x4x256xf32> to vector<4x256xf32>
    %c0_4 = arith.constant 0 : index
    %c0_5 = arith.constant 0 : index
    %7 = vector.load %arg3[%c0_4, %c0_5] : memref<4x1xf32, #tpu.memory_space<vmem>>, vector<4x1xf32>
    %8 = vector.broadcast %7 : vector<4x1xf32> to vector<4x256xf32>
    %9 = arith.mulf %6, %8 : vector<4x256xf32>
    %c0_6 = arith.constant 0 : index
    %c0_7 = arith.constant 0 : index
    %10 = vector.load %arg4[%c0_6, %c0_7] : memref<4x1xf32, #tpu.memory_space<vmem>>, vector<4x1xf32>
    %11 = vector.broadcast %10 : vector<4x1xf32> to vector<4x256xf32>
    %12 = arith.addf %9, %11 : vector<4x256xf32>
    %cst = arith.constant 0.000000e+00 : f32
    %cst_8 = arith.constant 6.000000e+00 : f32
    %13 = vector.broadcast %cst : f32 to vector<4x256xf32>
    %14 = arith.maximumf %13, %12 : vector<4x256xf32>
    %15 = vector.broadcast %cst_8 : f32 to vector<4x256xf32>
    %16 = arith.minimumf %15, %14 : vector<4x256xf32>
    %c0_9 = arith.constant 0 : index
    %c0_10 = arith.constant 0 : index
    %17 = vector.load %arg5[%c0_9, %c0_10] : memref<8x4xf32, #tpu.memory_space<vmem>>, vector<8x4xf32>
    %cst_11 = arith.constant dense<0.000000e+00> : vector<8x256xf32>
    %18 = tpu.matmul %17, %16, %cst_11 {dimension_numbers = #tpu.dot_dimension_numbers<[1], [0], [0], [1], [0, 0, 1, 1], [], []>} : vector<8x4xf32>, vector<4x256xf32>, vector<8x256xf32> -> vector<8x256xf32>
    %c0_12 = arith.constant 0 : index
    %c0_13 = arith.constant 0 : index
    %c0_14 = arith.constant 0 : index
    %19 = vector.load %arg6[%c0_12, %c0_13, %c0_14] : memref<2x8x256xf32, #tpu.memory_space<vmem>>, vector<1x8x256xf32>
    %20 = vector.shape_cast %19 : vector<1x8x256xf32> to vector<8x256xf32>
    %21 = arith.addf %20, %18 : vector<8x256xf32>
    %c0_15 = arith.constant 0 : index
    %c0_16 = arith.constant 0 : index
    %c0_17 = arith.constant 0 : index
    %22 = vector.load %arg6[%c0_15, %c0_16, %c0_17] : memref<2x8x256xf32, #tpu.memory_space<vmem>>, vector<1x8x256xf32>
    %23 = vector.shape_cast %22 : vector<1x8x256xf32> to vector<8x256xf32>
    %24 = vector.shape_cast %21 : vector<8x256xf32> to vector<1x8x256xf32>
    tpu.vector_store %arg6[%c0_15, %c0_16, %c0_17], %24 {strides = array<i32>} : memref<2x8x256xf32, #tpu.memory_space<vmem>>, vector<1x8x256xf32>,
    %c1 = arith.constant 1 : index
    %c0_18 = arith.constant 0 : index
    %c0_19 = arith.constant 0 : index
    %25 = vector.load %arg6[%c1, %c0_18, %c0_19] : memref<2x8x256xf32, #tpu.memory_space<vmem>>, vector<1x8x256xf32>
    %26 = vector.shape_cast %25 : vector<1x8x256xf32> to vector<8x256xf32>
    %27 = arith.mulf %18, %18 : vector<8x256xf32>
    %28 = arith.addf %26, %27 : vector<8x256xf32>
    %c1_20 = arith.constant 1 : index
    %c0_21 = arith.constant 0 : index
    %c0_22 = arith.constant 0 : index
    %29 = vector.load %arg6[%c1_20, %c0_21, %c0_22] : memref<2x8x256xf32, #tpu.memory_space<vmem>>, vector<1x8x256xf32>
    %30 = vector.shape_cast %29 : vector<1x8x256xf32> to vector<8x256xf32>
    %31 = vector.shape_cast %28 : vector<8x256xf32> to vector<1x8x256xf32>
    tpu.vector_store %arg6[%c1_20, %c0_21, %c0_22], %31 {strides = array<i32>} : memref<2x8x256xf32, #tpu.memory_space<vmem>>, vector<1x8x256xf32>,
    return
  }
  func.func @transform_0(%arg0: i32, %arg1: i32) -> (i32, i32, i32) {
    %c0_i32 = arith.constant 0 : i32
    %c0_i32_0 = arith.constant 0 : i32
    return %arg0, %c0_i32, %arg1 : i32, i32, i32
  }
  func.func @transform_1(%arg0: i32, %arg1: i32) -> (i32, i32) {
    %c0_i32 = arith.constant 0 : i32
    %c0_i32_0 = arith.constant 0 : i32
    %c0_i32_1 = arith.constant 0 : i32
    return %c0_i32, %c0_i32_0 : i32, i32
  }
  func.func @transform_2(%arg0: i32, %arg1: i32) -> (i32, i32) {
    %c0_i32 = arith.constant 0 : i32
    %c0_i32_0 = arith.constant 0 : i32
    %c0_i32_1 = arith.constant 0 : i32
    return %c0_i32, %c0_i32_0 : i32, i32
  }
  func.func @transform_3(%arg0: i32, %arg1: i32) -> (i32, i32) {
    %c0_i32 = arith.constant 0 : i32
    %c0_i32_0 = arith.constant 0 : i32
    %c0_i32_1 = arith.constant 0 : i32
    return %c0_i32, %c0_i32_0 : i32, i32
  }
  func.func @transform_4(%arg0: i32, %arg1: i32) -> (i32, i32, i32) {
    %c0_i32 = arith.constant 0 : i32
    %c0_i32_0 = arith.constant 0 : i32
    %c0_i32_1 = arith.constant 0 : i32
    %c0_i32_2 = arith.constant 0 : i32
    return %c0_i32, %c0_i32_0, %c0_i32_1 : i32, i32, i32
  }
}

module attributes {stable_mosaic.version = 11 : i64} {
  func.func @_pw_final_kernel(%arg0: i32, %arg1: i32, %arg2: memref<1x4x256xf32, #tpu.memory_space<vmem>>, %arg3: memref<4x1xf32, #tpu.memory_space<vmem>>, %arg4: memref<4x1xf32, #tpu.memory_space<vmem>>, %arg5: memref<8x4xf32, #tpu.memory_space<vmem>>, %arg6: memref<8x1xf32, #tpu.memory_space<vmem>>, %arg7: memref<8x1xf32, #tpu.memory_space<vmem>>, %arg8: memref<1x8x256xf32, #tpu.memory_space<vmem>>) attributes {dimension_semantics = [#tpu.dimension_semantics<parallel>, #tpu.dimension_semantics<parallel>], iteration_bounds = array<i64: 2, 1>, scalar_prefetch = 0 : i64, scratch_operands = 0 : i64, tpu.core_type = #tpu.core_type<tc>, window_params = [{transform_indices = @transform_0, window_bounds = array<i64: 1, 4, 256>}, {pipeline_mode = #tpu.pipeline_mode<synchronous>, transform_indices = @transform_1, window_bounds = array<i64: 4, 1>}, {pipeline_mode = #tpu.pipeline_mode<synchronous>, transform_indices = @transform_2, window_bounds = array<i64: 4, 1>}, {pipeline_mode = #tpu.pipeline_mode<synchronous>, transform_indices = @transform_3, window_bounds = array<i64: 8, 4>}, {pipeline_mode = #tpu.pipeline_mode<synchronous>, transform_indices = @transform_4, window_bounds = array<i64: 8, 1>}, {pipeline_mode = #tpu.pipeline_mode<synchronous>, transform_indices = @transform_5, window_bounds = array<i64: 8, 1>}, {transform_indices = @transform_6, window_bounds = array<i64: 1, 8, 256>}]} {
    %c0 = arith.constant 0 : index
    %c0_0 = arith.constant 0 : index
    %c0_1 = arith.constant 0 : index
    %0 = vector.load %arg2[%c0, %c0_0, %c0_1] : memref<1x4x256xf32, #tpu.memory_space<vmem>>, vector<1x4x256xf32>
    %1 = vector.shape_cast %0 : vector<1x4x256xf32> to vector<4x256xf32>
    %c0_2 = arith.constant 0 : index
    %c0_3 = arith.constant 0 : index
    %2 = vector.load %arg3[%c0_2, %c0_3] : memref<4x1xf32, #tpu.memory_space<vmem>>, vector<4x1xf32>
    %3 = vector.broadcast %2 : vector<4x1xf32> to vector<4x256xf32>
    %4 = arith.mulf %1, %3 : vector<4x256xf32>
    %c0_4 = arith.constant 0 : index
    %c0_5 = arith.constant 0 : index
    %5 = vector.load %arg4[%c0_4, %c0_5] : memref<4x1xf32, #tpu.memory_space<vmem>>, vector<4x1xf32>
    %6 = vector.broadcast %5 : vector<4x1xf32> to vector<4x256xf32>
    %7 = arith.addf %4, %6 : vector<4x256xf32>
    %cst = arith.constant 0.000000e+00 : f32
    %cst_6 = arith.constant 6.000000e+00 : f32
    %8 = vector.broadcast %cst : f32 to vector<4x256xf32>
    %9 = arith.maximumf %8, %7 : vector<4x256xf32>
    %10 = vector.broadcast %cst_6 : f32 to vector<4x256xf32>
    %11 = arith.minimumf %10, %9 : vector<4x256xf32>
    %c0_7 = arith.constant 0 : index
    %c0_8 = arith.constant 0 : index
    %12 = vector.load %arg5[%c0_7, %c0_8] : memref<8x4xf32, #tpu.memory_space<vmem>>, vector<8x4xf32>
    %cst_9 = arith.constant dense<0.000000e+00> : vector<8x256xf32>
    %13 = tpu.matmul %12, %11, %cst_9 {dimension_numbers = #tpu.dot_dimension_numbers<[1], [0], [0], [1], [0, 0, 1, 1], [], []>} : vector<8x4xf32>, vector<4x256xf32>, vector<8x256xf32> -> vector<8x256xf32>
    %c0_10 = arith.constant 0 : index
    %c0_11 = arith.constant 0 : index
    %14 = vector.load %arg6[%c0_10, %c0_11] : memref<8x1xf32, #tpu.memory_space<vmem>>, vector<8x1xf32>
    %15 = vector.broadcast %14 : vector<8x1xf32> to vector<8x256xf32>
    %16 = arith.mulf %13, %15 : vector<8x256xf32>
    %c0_12 = arith.constant 0 : index
    %c0_13 = arith.constant 0 : index
    %17 = vector.load %arg7[%c0_12, %c0_13] : memref<8x1xf32, #tpu.memory_space<vmem>>, vector<8x1xf32>
    %18 = vector.broadcast %17 : vector<8x1xf32> to vector<8x256xf32>
    %19 = arith.addf %16, %18 : vector<8x256xf32>
    %c0_14 = arith.constant 0 : index
    %c0_15 = arith.constant 0 : index
    %c0_16 = arith.constant 0 : index
    %20 = vector.load %arg8[%c0_14, %c0_15, %c0_16] : memref<1x8x256xf32, #tpu.memory_space<vmem>>, vector<1x8x256xf32>
    %21 = vector.shape_cast %20 : vector<1x8x256xf32> to vector<8x256xf32>
    %22 = vector.shape_cast %19 : vector<8x256xf32> to vector<1x8x256xf32>
    tpu.vector_store %arg8[%c0_14, %c0_15, %c0_16], %22 {strides = array<i32>} : memref<1x8x256xf32, #tpu.memory_space<vmem>>, vector<1x8x256xf32>,
    return
  }
  func.func @transform_0(%arg0: i32, %arg1: i32) -> (i32, i32, i32) {
    %c0_i32 = arith.constant 0 : i32
    %c0_i32_0 = arith.constant 0 : i32
    return %arg0, %c0_i32, %arg1 : i32, i32, i32
  }
  func.func @transform_1(%arg0: i32, %arg1: i32) -> (i32, i32) {
    %c0_i32 = arith.constant 0 : i32
    %c0_i32_0 = arith.constant 0 : i32
    %c0_i32_1 = arith.constant 0 : i32
    return %c0_i32, %c0_i32_0 : i32, i32
  }
  func.func @transform_2(%arg0: i32, %arg1: i32) -> (i32, i32) {
    %c0_i32 = arith.constant 0 : i32
    %c0_i32_0 = arith.constant 0 : i32
    %c0_i32_1 = arith.constant 0 : i32
    return %c0_i32, %c0_i32_0 : i32, i32
  }
  func.func @transform_3(%arg0: i32, %arg1: i32) -> (i32, i32) {
    %c0_i32 = arith.constant 0 : i32
    %c0_i32_0 = arith.constant 0 : i32
    %c0_i32_1 = arith.constant 0 : i32
    return %c0_i32, %c0_i32_0 : i32, i32
  }
  func.func @transform_4(%arg0: i32, %arg1: i32) -> (i32, i32) {
    %c0_i32 = arith.constant 0 : i32
    %c0_i32_0 = arith.constant 0 : i32
    %c0_i32_1 = arith.constant 0 : i32
    return %c0_i32, %c0_i32_0 : i32, i32
  }
  func.func @transform_5(%arg0: i32, %arg1: i32) -> (i32, i32) {
    %c0_i32 = arith.constant 0 : i32
    %c0_i32_0 = arith.constant 0 : i32
    %c0_i32_1 = arith.constant 0 : i32
    return %c0_i32, %c0_i32_0 : i32, i32
  }
  func.func @transform_6(%arg0: i32, %arg1: i32) -> (i32, i32, i32) {
    %c0_i32 = arith.constant 0 : i32
    %c0_i32_0 = arith.constant 0 : i32
    return %arg0, %c0_i32, %arg1 : i32, i32, i32
  }
}

module attributes {stable_mosaic.version = 11 : i64} {
  func.func @_dw_conv_kernel(%arg0: i32, %arg1: memref<4x9xf32, #tpu.memory_space<smem>>, %arg2: memref<1x4x18x18xf32, #tpu.memory_space<vmem>>, %arg3: memref<1x4x16x16xf32, #tpu.memory_space<vmem>>, %arg4: memref<2x4x16x16xf32, #tpu.memory_space<vmem>>) attributes {dimension_semantics = [#tpu.dimension_semantics<arbitrary>], iteration_bounds = array<i64: 2>, scalar_prefetch = 0 : i64, scratch_operands = 0 : i64, tpu.core_type = #tpu.core_type<tc>, window_params = [{transform_indices = @transform_0, window_bounds = array<i64: 4, 9>}, {transform_indices = @transform_1, window_bounds = array<i64: 1, 4, 18, 18>}, {transform_indices = @transform_2, window_bounds = array<i64: 1, 4, 16, 16>}, {pipeline_mode = #tpu.pipeline_mode<synchronous>, transform_indices = @transform_3, window_bounds = array<i64: 2, 4, 16, 16>}]} {
    %c0_i32 = arith.constant 0 : i32
    %0 = arith.cmpi eq, %arg0, %c0_i32 : i32
    %1 = arith.extui %0 : i1 to i32
    %c0_i32_0 = arith.constant 0 : i32
    %2 = arith.cmpi ne, %1, %c0_i32_0 : i32
    scf.if %2 {
      %cst = arith.constant 0.000000e+00 : f32
      %279 = vector.broadcast %cst : f32 to vector<2x4x16x16xf32>
      %c0_288 = arith.constant 0 : index
      %c0_289 = arith.constant 0 : index
      %c0_290 = arith.constant 0 : index
      %c0_291 = arith.constant 0 : index
      %280 = vector.load %arg4[%c0_288, %c0_289, %c0_290, %c0_291] : memref<2x4x16x16xf32, #tpu.memory_space<vmem>>, vector<2x4x16x16xf32>
      tpu.vector_store %arg4[%c0_288, %c0_289, %c0_290, %c0_291], %279 {strides = array<i32>} : memref<2x4x16x16xf32, #tpu.memory_space<vmem>>, vector<2x4x16x16xf32>,
    } else {
    }
    %c0 = arith.constant 0 : index
    %c0_1 = arith.constant 0 : index
    %3 = memref.load %arg1[%c0, %c0_1] : memref<4x9xf32, #tpu.memory_space<smem>>
    %c0_2 = arith.constant 0 : index
    %c0_3 = arith.constant 0 : index
    %c0_4 = arith.constant 0 : index
    %c0_5 = arith.constant 0 : index
    %4 = vector.load %arg2[%c0_2, %c0_3, %c0_4, %c0_5] : memref<1x4x18x18xf32, #tpu.memory_space<vmem>>, vector<1x1x16x16xf32>
    %5 = vector.shape_cast %4 : vector<1x1x16x16xf32> to vector<16x16xf32>
    %6 = vector.broadcast %3 : f32 to vector<16x16xf32>
    %7 = arith.mulf %6, %5 : vector<16x16xf32>
    %c0_6 = arith.constant 0 : index
    %c1 = arith.constant 1 : index
    %8 = memref.load %arg1[%c0_6, %c1] : memref<4x9xf32, #tpu.memory_space<smem>>
    %c0_7 = arith.constant 0 : index
    %c0_8 = arith.constant 0 : index
    %c0_9 = arith.constant 0 : index
    %c1_10 = arith.constant 1 : index
    %9 = vector.load %arg2[%c0_7, %c0_8, %c0_9, %c1_10] : memref<1x4x18x18xf32, #tpu.memory_space<vmem>>, vector<1x1x16x16xf32>
    %10 = vector.shape_cast %9 : vector<1x1x16x16xf32> to vector<16x16xf32>
    %11 = vector.broadcast %8 : f32 to vector<16x16xf32>
    %12 = arith.mulf %11, %10 : vector<16x16xf32>
    %13 = arith.addf %7, %12 : vector<16x16xf32>
    %c0_11 = arith.constant 0 : index
    %c2 = arith.constant 2 : index
    %14 = memref.load %arg1[%c0_11, %c2] : memref<4x9xf32, #tpu.memory_space<smem>>
    %c0_12 = arith.constant 0 : index
    %c0_13 = arith.constant 0 : index
    %c0_14 = arith.constant 0 : index
    %c2_15 = arith.constant 2 : index
    %15 = vector.load %arg2[%c0_12, %c0_13, %c0_14, %c2_15] : memref<1x4x18x18xf32, #tpu.memory_space<vmem>>, vector<1x1x16x16xf32>
    %16 = vector.shape_cast %15 : vector<1x1x16x16xf32> to vector<16x16xf32>
    %17 = vector.broadcast %14 : f32 to vector<16x16xf32>
    %18 = arith.mulf %17, %16 : vector<16x16xf32>
    %19 = arith.addf %13, %18 : vector<16x16xf32>
    %c0_16 = arith.constant 0 : index
    %c3 = arith.constant 3 : index
    %20 = memref.load %arg1[%c0_16, %c3] : memref<4x9xf32, #tpu.memory_space<smem>>
    %c0_17 = arith.constant 0 : index
    %c0_18 = arith.constant 0 : index
    %c1_19 = arith.constant 1 : index
    %c0_20 = arith.constant 0 : index
    %21 = vector.load %arg2[%c0_17, %c0_18, %c1_19, %c0_20] : memref<1x4x18x18xf32, #tpu.memory_space<vmem>>, vector<1x1x16x16xf32>
    %22 = vector.shape_cast %21 : vector<1x1x16x16xf32> to vector<16x16xf32>
    %23 = vector.broadcast %20 : f32 to vector<16x16xf32>
    %24 = arith.mulf %23, %22 : vector<16x16xf32>
    %25 = arith.addf %19, %24 : vector<16x16xf32>
    %c0_21 = arith.constant 0 : index
    %c4 = arith.constant 4 : index
    %26 = memref.load %arg1[%c0_21, %c4] : memref<4x9xf32, #tpu.memory_space<smem>>
    %c0_22 = arith.constant 0 : index
    %c0_23 = arith.constant 0 : index
    %c1_24 = arith.constant 1 : index
    %c1_25 = arith.constant 1 : index
    %27 = vector.load %arg2[%c0_22, %c0_23, %c1_24, %c1_25] : memref<1x4x18x18xf32, #tpu.memory_space<vmem>>, vector<1x1x16x16xf32>
    %28 = vector.shape_cast %27 : vector<1x1x16x16xf32> to vector<16x16xf32>
    %29 = vector.broadcast %26 : f32 to vector<16x16xf32>
    %30 = arith.mulf %29, %28 : vector<16x16xf32>
    %31 = arith.addf %25, %30 : vector<16x16xf32>
    %c0_26 = arith.constant 0 : index
    %c5 = arith.constant 5 : index
    %32 = memref.load %arg1[%c0_26, %c5] : memref<4x9xf32, #tpu.memory_space<smem>>
    %c0_27 = arith.constant 0 : index
    %c0_28 = arith.constant 0 : index
    %c1_29 = arith.constant 1 : index
    %c2_30 = arith.constant 2 : index
    %33 = vector.load %arg2[%c0_27, %c0_28, %c1_29, %c2_30] : memref<1x4x18x18xf32, #tpu.memory_space<vmem>>, vector<1x1x16x16xf32>
    %34 = vector.shape_cast %33 : vector<1x1x16x16xf32> to vector<16x16xf32>
    %35 = vector.broadcast %32 : f32 to vector<16x16xf32>
    %36 = arith.mulf %35, %34 : vector<16x16xf32>
    %37 = arith.addf %31, %36 : vector<16x16xf32>
    %c0_31 = arith.constant 0 : index
    %c6 = arith.constant 6 : index
    %38 = memref.load %arg1[%c0_31, %c6] : memref<4x9xf32, #tpu.memory_space<smem>>
    %c0_32 = arith.constant 0 : index
    %c0_33 = arith.constant 0 : index
    %c2_34 = arith.constant 2 : index
    %c0_35 = arith.constant 0 : index
    %39 = vector.load %arg2[%c0_32, %c0_33, %c2_34, %c0_35] : memref<1x4x18x18xf32, #tpu.memory_space<vmem>>, vector<1x1x16x16xf32>
    %40 = vector.shape_cast %39 : vector<1x1x16x16xf32> to vector<16x16xf32>
    %41 = vector.broadcast %38 : f32 to vector<16x16xf32>
    %42 = arith.mulf %41, %40 : vector<16x16xf32>
    %43 = arith.addf %37, %42 : vector<16x16xf32>
    %c0_36 = arith.constant 0 : index
    %c7 = arith.constant 7 : index
    %44 = memref.load %arg1[%c0_36, %c7] : memref<4x9xf32, #tpu.memory_space<smem>>
    %c0_37 = arith.constant 0 : index
    %c0_38 = arith.constant 0 : index
    %c2_39 = arith.constant 2 : index
    %c1_40 = arith.constant 1 : index
    %45 = vector.load %arg2[%c0_37, %c0_38, %c2_39, %c1_40] : memref<1x4x18x18xf32, #tpu.memory_space<vmem>>, vector<1x1x16x16xf32>
    %46 = vector.shape_cast %45 : vector<1x1x16x16xf32> to vector<16x16xf32>
    %47 = vector.broadcast %44 : f32 to vector<16x16xf32>
    %48 = arith.mulf %47, %46 : vector<16x16xf32>
    %49 = arith.addf %43, %48 : vector<16x16xf32>
    %c0_41 = arith.constant 0 : index
    %c8 = arith.constant 8 : index
    %50 = memref.load %arg1[%c0_41, %c8] : memref<4x9xf32, #tpu.memory_space<smem>>
    %c0_42 = arith.constant 0 : index
    %c0_43 = arith.constant 0 : index
    %c2_44 = arith.constant 2 : index
    %c2_45 = arith.constant 2 : index
    %51 = vector.load %arg2[%c0_42, %c0_43, %c2_44, %c2_45] : memref<1x4x18x18xf32, #tpu.memory_space<vmem>>, vector<1x1x16x16xf32>
    %52 = vector.shape_cast %51 : vector<1x1x16x16xf32> to vector<16x16xf32>
    %53 = vector.broadcast %50 : f32 to vector<16x16xf32>
    %54 = arith.mulf %53, %52 : vector<16x16xf32>
    %55 = arith.addf %49, %54 : vector<16x16xf32>
    %c0_46 = arith.constant 0 : index
    %c0_47 = arith.constant 0 : index
    %c0_48 = arith.constant 0 : index
    %c0_49 = arith.constant 0 : index
    %56 = vector.load %arg3[%c0_46, %c0_47, %c0_48, %c0_49] : memref<1x4x16x16xf32, #tpu.memory_space<vmem>>, vector<1x1x16x16xf32>
    %57 = vector.shape_cast %56 : vector<1x1x16x16xf32> to vector<16x16xf32>
    %58 = vector.shape_cast %55 : vector<16x16xf32> to vector<1x1x16x16xf32>
    tpu.vector_store %arg3[%c0_46, %c0_47, %c0_48, %c0_49], %58 {strides = array<i32>} : memref<1x4x16x16xf32, #tpu.memory_space<vmem>>, vector<1x1x16x16xf32>,
    %c0_50 = arith.constant 0 : index
    %c0_51 = arith.constant 0 : index
    %c0_52 = arith.constant 0 : index
    %c0_53 = arith.constant 0 : index
    %59 = vector.load %arg4[%c0_50, %c0_51, %c0_52, %c0_53] : memref<2x4x16x16xf32, #tpu.memory_space<vmem>>, vector<1x1x16x16xf32>
    %60 = vector.shape_cast %59 : vector<1x1x16x16xf32> to vector<16x16xf32>
    %61 = arith.addf %60, %55 : vector<16x16xf32>
    %c0_54 = arith.constant 0 : index
    %c0_55 = arith.constant 0 : index
    %c0_56 = arith.constant 0 : index
    %c0_57 = arith.constant 0 : index
    %62 = vector.load %arg4[%c0_54, %c0_55, %c0_56, %c0_57] : memref<2x4x16x16xf32, #tpu.memory_space<vmem>>, vector<1x1x16x16xf32>
    %63 = vector.shape_cast %62 : vector<1x1x16x16xf32> to vector<16x16xf32>
    %64 = vector.shape_cast %61 : vector<16x16xf32> to vector<1x1x16x16xf32>
    tpu.vector_store %arg4[%c0_54, %c0_55, %c0_56, %c0_57], %64 {strides = array<i32>} : memref<2x4x16x16xf32, #tpu.memory_space<vmem>>, vector<1x1x16x16xf32>,
    %c1_58 = arith.constant 1 : index
    %c0_59 = arith.constant 0 : index
    %c0_60 = arith.constant 0 : index
    %c0_61 = arith.constant 0 : index
    %65 = vector.load %arg4[%c1_58, %c0_59, %c0_60, %c0_61] : memref<2x4x16x16xf32, #tpu.memory_space<vmem>>, vector<1x1x16x16xf32>
    %66 = vector.shape_cast %65 : vector<1x1x16x16xf32> to vector<16x16xf32>
    %67 = arith.mulf %55, %55 : vector<16x16xf32>
    %68 = arith.addf %66, %67 : vector<16x16xf32>
    %c1_62 = arith.constant 1 : index
    %c0_63 = arith.constant 0 : index
    %c0_64 = arith.constant 0 : index
    %c0_65 = arith.constant 0 : index
    %69 = vector.load %arg4[%c1_62, %c0_63, %c0_64, %c0_65] : memref<2x4x16x16xf32, #tpu.memory_space<vmem>>, vector<1x1x16x16xf32>
    %70 = vector.shape_cast %69 : vector<1x1x16x16xf32> to vector<16x16xf32>
    %71 = vector.shape_cast %68 : vector<16x16xf32> to vector<1x1x16x16xf32>
    tpu.vector_store %arg4[%c1_62, %c0_63, %c0_64, %c0_65], %71 {strides = array<i32>} : memref<2x4x16x16xf32, #tpu.memory_space<vmem>>, vector<1x1x16x16xf32>,
    %c1_66 = arith.constant 1 : index
    %c0_67 = arith.constant 0 : index
    %72 = memref.load %arg1[%c1_66, %c0_67] : memref<4x9xf32, #tpu.memory_space<smem>>
    %c0_68 = arith.constant 0 : index
    %c1_69 = arith.constant 1 : index
    %c0_70 = arith.constant 0 : index
    %c0_71 = arith.constant 0 : index
    %73 = vector.load %arg2[%c0_68, %c1_69, %c0_70, %c0_71] : memref<1x4x18x18xf32, #tpu.memory_space<vmem>>, vector<1x1x16x16xf32>
    %74 = vector.shape_cast %73 : vector<1x1x16x16xf32> to vector<16x16xf32>
    %75 = vector.broadcast %72 : f32 to vector<16x16xf32>
    %76 = arith.mulf %75, %74 : vector<16x16xf32>
    %c1_72 = arith.constant 1 : index
    %c1_73 = arith.constant 1 : index
    %77 = memref.load %arg1[%c1_72, %c1_73] : memref<4x9xf32, #tpu.memory_space<smem>>
    %c0_74 = arith.constant 0 : index
    %c1_75 = arith.constant 1 : index
    %c0_76 = arith.constant 0 : index
    %c1_77 = arith.constant 1 : index
    %78 = vector.load %arg2[%c0_74, %c1_75, %c0_76, %c1_77] : memref<1x4x18x18xf32, #tpu.memory_space<vmem>>, vector<1x1x16x16xf32>
    %79 = vector.shape_cast %78 : vector<1x1x16x16xf32> to vector<16x16xf32>
    %80 = vector.broadcast %77 : f32 to vector<16x16xf32>
    %81 = arith.mulf %80, %79 : vector<16x16xf32>
    %82 = arith.addf %76, %81 : vector<16x16xf32>
    %c1_78 = arith.constant 1 : index
    %c2_79 = arith.constant 2 : index
    %83 = memref.load %arg1[%c1_78, %c2_79] : memref<4x9xf32, #tpu.memory_space<smem>>
    %c0_80 = arith.constant 0 : index
    %c1_81 = arith.constant 1 : index
    %c0_82 = arith.constant 0 : index
    %c2_83 = arith.constant 2 : index
    %84 = vector.load %arg2[%c0_80, %c1_81, %c0_82, %c2_83] : memref<1x4x18x18xf32, #tpu.memory_space<vmem>>, vector<1x1x16x16xf32>
    %85 = vector.shape_cast %84 : vector<1x1x16x16xf32> to vector<16x16xf32>
    %86 = vector.broadcast %83 : f32 to vector<16x16xf32>
    %87 = arith.mulf %86, %85 : vector<16x16xf32>
    %88 = arith.addf %82, %87 : vector<16x16xf32>
    %c1_84 = arith.constant 1 : index
    %c3_85 = arith.constant 3 : index
    %89 = memref.load %arg1[%c1_84, %c3_85] : memref<4x9xf32, #tpu.memory_space<smem>>
    %c0_86 = arith.constant 0 : index
    %c1_87 = arith.constant 1 : index
    %c1_88 = arith.constant 1 : index
    %c0_89 = arith.constant 0 : index
    %90 = vector.load %arg2[%c0_86, %c1_87, %c1_88, %c0_89] : memref<1x4x18x18xf32, #tpu.memory_space<vmem>>, vector<1x1x16x16xf32>
    %91 = vector.shape_cast %90 : vector<1x1x16x16xf32> to vector<16x16xf32>
    %92 = vector.broadcast %89 : f32 to vector<16x16xf32>
    %93 = arith.mulf %92, %91 : vector<16x16xf32>
    %94 = arith.addf %88, %93 : vector<16x16xf32>
    %c1_90 = arith.constant 1 : index
    %c4_91 = arith.constant 4 : index
    %95 = memref.load %arg1[%c1_90, %c4_91] : memref<4x9xf32, #tpu.memory_space<smem>>
    %c0_92 = arith.constant 0 : index
    %c1_93 = arith.constant 1 : index
    %c1_94 = arith.constant 1 : index
    %c1_95 = arith.constant 1 : index
    %96 = vector.load %arg2[%c0_92, %c1_93, %c1_94, %c1_95] : memref<1x4x18x18xf32, #tpu.memory_space<vmem>>, vector<1x1x16x16xf32>
    %97 = vector.shape_cast %96 : vector<1x1x16x16xf32> to vector<16x16xf32>
    %98 = vector.broadcast %95 : f32 to vector<16x16xf32>
    %99 = arith.mulf %98, %97 : vector<16x16xf32>
    %100 = arith.addf %94, %99 : vector<16x16xf32>
    %c1_96 = arith.constant 1 : index
    %c5_97 = arith.constant 5 : index
    %101 = memref.load %arg1[%c1_96, %c5_97] : memref<4x9xf32, #tpu.memory_space<smem>>
    %c0_98 = arith.constant 0 : index
    %c1_99 = arith.constant 1 : index
    %c1_100 = arith.constant 1 : index
    %c2_101 = arith.constant 2 : index
    %102 = vector.load %arg2[%c0_98, %c1_99, %c1_100, %c2_101] : memref<1x4x18x18xf32, #tpu.memory_space<vmem>>, vector<1x1x16x16xf32>
    %103 = vector.shape_cast %102 : vector<1x1x16x16xf32> to vector<16x16xf32>
    %104 = vector.broadcast %101 : f32 to vector<16x16xf32>
    %105 = arith.mulf %104, %103 : vector<16x16xf32>
    %106 = arith.addf %100, %105 : vector<16x16xf32>
    %c1_102 = arith.constant 1 : index
    %c6_103 = arith.constant 6 : index
    %107 = memref.load %arg1[%c1_102, %c6_103] : memref<4x9xf32, #tpu.memory_space<smem>>
    %c0_104 = arith.constant 0 : index
    %c1_105 = arith.constant 1 : index
    %c2_106 = arith.constant 2 : index
    %c0_107 = arith.constant 0 : index
    %108 = vector.load %arg2[%c0_104, %c1_105, %c2_106, %c0_107] : memref<1x4x18x18xf32, #tpu.memory_space<vmem>>, vector<1x1x16x16xf32>
    %109 = vector.shape_cast %108 : vector<1x1x16x16xf32> to vector<16x16xf32>
    %110 = vector.broadcast %107 : f32 to vector<16x16xf32>
    %111 = arith.mulf %110, %109 : vector<16x16xf32>
    %112 = arith.addf %106, %111 : vector<16x16xf32>
    %c1_108 = arith.constant 1 : index
    %c7_109 = arith.constant 7 : index
    %113 = memref.load %arg1[%c1_108, %c7_109] : memref<4x9xf32, #tpu.memory_space<smem>>
    %c0_110 = arith.constant 0 : index
    %c1_111 = arith.constant 1 : index
    %c2_112 = arith.constant 2 : index
    %c1_113 = arith.constant 1 : index
    %114 = vector.load %arg2[%c0_110, %c1_111, %c2_112, %c1_113] : memref<1x4x18x18xf32, #tpu.memory_space<vmem>>, vector<1x1x16x16xf32>
    %115 = vector.shape_cast %114 : vector<1x1x16x16xf32> to vector<16x16xf32>
    %116 = vector.broadcast %113 : f32 to vector<16x16xf32>
    %117 = arith.mulf %116, %115 : vector<16x16xf32>
    %118 = arith.addf %112, %117 : vector<16x16xf32>
    %c1_114 = arith.constant 1 : index
    %c8_115 = arith.constant 8 : index
    %119 = memref.load %arg1[%c1_114, %c8_115] : memref<4x9xf32, #tpu.memory_space<smem>>
    %c0_116 = arith.constant 0 : index
    %c1_117 = arith.constant 1 : index
    %c2_118 = arith.constant 2 : index
    %c2_119 = arith.constant 2 : index
    %120 = vector.load %arg2[%c0_116, %c1_117, %c2_118, %c2_119] : memref<1x4x18x18xf32, #tpu.memory_space<vmem>>, vector<1x1x16x16xf32>
    %121 = vector.shape_cast %120 : vector<1x1x16x16xf32> to vector<16x16xf32>
    %122 = vector.broadcast %119 : f32 to vector<16x16xf32>
    %123 = arith.mulf %122, %121 : vector<16x16xf32>
    %124 = arith.addf %118, %123 : vector<16x16xf32>
    %c0_120 = arith.constant 0 : index
    %c1_121 = arith.constant 1 : index
    %c0_122 = arith.constant 0 : index
    %c0_123 = arith.constant 0 : index
    %125 = vector.load %arg3[%c0_120, %c1_121, %c0_122, %c0_123] : memref<1x4x16x16xf32, #tpu.memory_space<vmem>>, vector<1x1x16x16xf32>
    %126 = vector.shape_cast %125 : vector<1x1x16x16xf32> to vector<16x16xf32>
    %127 = vector.shape_cast %124 : vector<16x16xf32> to vector<1x1x16x16xf32>
    tpu.vector_store %arg3[%c0_120, %c1_121, %c0_122, %c0_123], %127 {strides = array<i32>} : memref<1x4x16x16xf32, #tpu.memory_space<vmem>>, vector<1x1x16x16xf32>,
    %c0_124 = arith.constant 0 : index
    %c1_125 = arith.constant 1 : index
    %c0_126 = arith.constant 0 : index
    %c0_127 = arith.constant 0 : index
    %128 = vector.load %arg4[%c0_124, %c1_125, %c0_126, %c0_127] : memref<2x4x16x16xf32, #tpu.memory_space<vmem>>, vector<1x1x16x16xf32>
    %129 = vector.shape_cast %128 : vector<1x1x16x16xf32> to vector<16x16xf32>
    %130 = arith.addf %129, %124 : vector<16x16xf32>
    %c0_128 = arith.constant 0 : index
    %c1_129 = arith.constant 1 : index
    %c0_130 = arith.constant 0 : index
    %c0_131 = arith.constant 0 : index
    %131 = vector.load %arg4[%c0_128, %c1_129, %c0_130, %c0_131] : memref<2x4x16x16xf32, #tpu.memory_space<vmem>>, vector<1x1x16x16xf32>
    %132 = vector.shape_cast %131 : vector<1x1x16x16xf32> to vector<16x16xf32>
    %133 = vector.shape_cast %130 : vector<16x16xf32> to vector<1x1x16x16xf32>
    tpu.vector_store %arg4[%c0_128, %c1_129, %c0_130, %c0_131], %133 {strides = array<i32>} : memref<2x4x16x16xf32, #tpu.memory_space<vmem>>, vector<1x1x16x16xf32>,
    %c1_132 = arith.constant 1 : index
    %c1_133 = arith.constant 1 : index
    %c0_134 = arith.constant 0 : index
    %c0_135 = arith.constant 0 : index
    %134 = vector.load %arg4[%c1_132, %c1_133, %c0_134, %c0_135] : memref<2x4x16x16xf32, #tpu.memory_space<vmem>>, vector<1x1x16x16xf32>
    %135 = vector.shape_cast %134 : vector<1x1x16x16xf32> to vector<16x16xf32>
    %136 = arith.mulf %124, %124 : vector<16x16xf32>
    %137 = arith.addf %135, %136 : vector<16x16xf32>
    %c1_136 = arith.constant 1 : index
    %c1_137 = arith.constant 1 : index
    %c0_138 = arith.constant 0 : index
    %c0_139 = arith.constant 0 : index
    %138 = vector.load %arg4[%c1_136, %c1_137, %c0_138, %c0_139] : memref<2x4x16x16xf32, #tpu.memory_space<vmem>>, vector<1x1x16x16xf32>
    %139 = vector.shape_cast %138 : vector<1x1x16x16xf32> to vector<16x16xf32>
    %140 = vector.shape_cast %137 : vector<16x16xf32> to vector<1x1x16x16xf32>
    tpu.vector_store %arg4[%c1_136, %c1_137, %c0_138, %c0_139], %140 {strides = array<i32>} : memref<2x4x16x16xf32, #tpu.memory_space<vmem>>, vector<1x1x16x16xf32>,
    %c2_140 = arith.constant 2 : index
    %c0_141 = arith.constant 0 : index
    %141 = memref.load %arg1[%c2_140, %c0_141] : memref<4x9xf32, #tpu.memory_space<smem>>
    %c0_142 = arith.constant 0 : index
    %c2_143 = arith.constant 2 : index
    %c0_144 = arith.constant 0 : index
    %c0_145 = arith.constant 0 : index
    %142 = vector.load %arg2[%c0_142, %c2_143, %c0_144, %c0_145] : memref<1x4x18x18xf32, #tpu.memory_space<vmem>>, vector<1x1x16x16xf32>
    %143 = vector.shape_cast %142 : vector<1x1x16x16xf32> to vector<16x16xf32>
    %144 = vector.broadcast %141 : f32 to vector<16x16xf32>
    %145 = arith.mulf %144, %143 : vector<16x16xf32>
    %c2_146 = arith.constant 2 : index
    %c1_147 = arith.constant 1 : index
    %146 = memref.load %arg1[%c2_146, %c1_147] : memref<4x9xf32, #tpu.memory_space<smem>>
    %c0_148 = arith.constant 0 : index
    %c2_149 = arith.constant 2 : index
    %c0_150 = arith.constant 0 : index
    %c1_151 = arith.constant 1 : index
    %147 = vector.load %arg2[%c0_148, %c2_149, %c0_150, %c1_151] : memref<1x4x18x18xf32, #tpu.memory_space<vmem>>, vector<1x1x16x16xf32>
    %148 = vector.shape_cast %147 : vector<1x1x16x16xf32> to vector<16x16xf32>
    %149 = vector.broadcast %146 : f32 to vector<16x16xf32>
    %150 = arith.mulf %149, %148 : vector<16x16xf32>
    %151 = arith.addf %145, %150 : vector<16x16xf32>
    %c2_152 = arith.constant 2 : index
    %c2_153 = arith.constant 2 : index
    %152 = memref.load %arg1[%c2_152, %c2_153] : memref<4x9xf32, #tpu.memory_space<smem>>
    %c0_154 = arith.constant 0 : index
    %c2_155 = arith.constant 2 : index
    %c0_156 = arith.constant 0 : index
    %c2_157 = arith.constant 2 : index
    %153 = vector.load %arg2[%c0_154, %c2_155, %c0_156, %c2_157] : memref<1x4x18x18xf32, #tpu.memory_space<vmem>>, vector<1x1x16x16xf32>
    %154 = vector.shape_cast %153 : vector<1x1x16x16xf32> to vector<16x16xf32>
    %155 = vector.broadcast %152 : f32 to vector<16x16xf32>
    %156 = arith.mulf %155, %154 : vector<16x16xf32>
    %157 = arith.addf %151, %156 : vector<16x16xf32>
    %c2_158 = arith.constant 2 : index
    %c3_159 = arith.constant 3 : index
    %158 = memref.load %arg1[%c2_158, %c3_159] : memref<4x9xf32, #tpu.memory_space<smem>>
    %c0_160 = arith.constant 0 : index
    %c2_161 = arith.constant 2 : index
    %c1_162 = arith.constant 1 : index
    %c0_163 = arith.constant 0 : index
    %159 = vector.load %arg2[%c0_160, %c2_161, %c1_162, %c0_163] : memref<1x4x18x18xf32, #tpu.memory_space<vmem>>, vector<1x1x16x16xf32>
    %160 = vector.shape_cast %159 : vector<1x1x16x16xf32> to vector<16x16xf32>
    %161 = vector.broadcast %158 : f32 to vector<16x16xf32>
    %162 = arith.mulf %161, %160 : vector<16x16xf32>
    %163 = arith.addf %157, %162 : vector<16x16xf32>
    %c2_164 = arith.constant 2 : index
    %c4_165 = arith.constant 4 : index
    %164 = memref.load %arg1[%c2_164, %c4_165] : memref<4x9xf32, #tpu.memory_space<smem>>
    %c0_166 = arith.constant 0 : index
    %c2_167 = arith.constant 2 : index
    %c1_168 = arith.constant 1 : index
    %c1_169 = arith.constant 1 : index
    %165 = vector.load %arg2[%c0_166, %c2_167, %c1_168, %c1_169] : memref<1x4x18x18xf32, #tpu.memory_space<vmem>>, vector<1x1x16x16xf32>
    %166 = vector.shape_cast %165 : vector<1x1x16x16xf32> to vector<16x16xf32>
    %167 = vector.broadcast %164 : f32 to vector<16x16xf32>
    %168 = arith.mulf %167, %166 : vector<16x16xf32>
    %169 = arith.addf %163, %168 : vector<16x16xf32>
    %c2_170 = arith.constant 2 : index
    %c5_171 = arith.constant 5 : index
    %170 = memref.load %arg1[%c2_170, %c5_171] : memref<4x9xf32, #tpu.memory_space<smem>>
    %c0_172 = arith.constant 0 : index
    %c2_173 = arith.constant 2 : index
    %c1_174 = arith.constant 1 : index
    %c2_175 = arith.constant 2 : index
    %171 = vector.load %arg2[%c0_172, %c2_173, %c1_174, %c2_175] : memref<1x4x18x18xf32, #tpu.memory_space<vmem>>, vector<1x1x16x16xf32>
    %172 = vector.shape_cast %171 : vector<1x1x16x16xf32> to vector<16x16xf32>
    %173 = vector.broadcast %170 : f32 to vector<16x16xf32>
    %174 = arith.mulf %173, %172 : vector<16x16xf32>
    %175 = arith.addf %169, %174 : vector<16x16xf32>
    %c2_176 = arith.constant 2 : index
    %c6_177 = arith.constant 6 : index
    %176 = memref.load %arg1[%c2_176, %c6_177] : memref<4x9xf32, #tpu.memory_space<smem>>
    %c0_178 = arith.constant 0 : index
    %c2_179 = arith.constant 2 : index
    %c2_180 = arith.constant 2 : index
    %c0_181 = arith.constant 0 : index
    %177 = vector.load %arg2[%c0_178, %c2_179, %c2_180, %c0_181] : memref<1x4x18x18xf32, #tpu.memory_space<vmem>>, vector<1x1x16x16xf32>
    %178 = vector.shape_cast %177 : vector<1x1x16x16xf32> to vector<16x16xf32>
    %179 = vector.broadcast %176 : f32 to vector<16x16xf32>
    %180 = arith.mulf %179, %178 : vector<16x16xf32>
    %181 = arith.addf %175, %180 : vector<16x16xf32>
    %c2_182 = arith.constant 2 : index
    %c7_183 = arith.constant 7 : index
    %182 = memref.load %arg1[%c2_182, %c7_183] : memref<4x9xf32, #tpu.memory_space<smem>>
    %c0_184 = arith.constant 0 : index
    %c2_185 = arith.constant 2 : index
    %c2_186 = arith.constant 2 : index
    %c1_187 = arith.constant 1 : index
    %183 = vector.load %arg2[%c0_184, %c2_185, %c2_186, %c1_187] : memref<1x4x18x18xf32, #tpu.memory_space<vmem>>, vector<1x1x16x16xf32>
    %184 = vector.shape_cast %183 : vector<1x1x16x16xf32> to vector<16x16xf32>
    %185 = vector.broadcast %182 : f32 to vector<16x16xf32>
    %186 = arith.mulf %185, %184 : vector<16x16xf32>
    %187 = arith.addf %181, %186 : vector<16x16xf32>
    %c2_188 = arith.constant 2 : index
    %c8_189 = arith.constant 8 : index
    %188 = memref.load %arg1[%c2_188, %c8_189] : memref<4x9xf32, #tpu.memory_space<smem>>
    %c0_190 = arith.constant 0 : index
    %c2_191 = arith.constant 2 : index
    %c2_192 = arith.constant 2 : index
    %c2_193 = arith.constant 2 : index
    %189 = vector.load %arg2[%c0_190, %c2_191, %c2_192, %c2_193] : memref<1x4x18x18xf32, #tpu.memory_space<vmem>>, vector<1x1x16x16xf32>
    %190 = vector.shape_cast %189 : vector<1x1x16x16xf32> to vector<16x16xf32>
    %191 = vector.broadcast %188 : f32 to vector<16x16xf32>
    %192 = arith.mulf %191, %190 : vector<16x16xf32>
    %193 = arith.addf %187, %192 : vector<16x16xf32>
    %c0_194 = arith.constant 0 : index
    %c2_195 = arith.constant 2 : index
    %c0_196 = arith.constant 0 : index
    %c0_197 = arith.constant 0 : index
    %194 = vector.load %arg3[%c0_194, %c2_195, %c0_196, %c0_197] : memref<1x4x16x16xf32, #tpu.memory_space<vmem>>, vector<1x1x16x16xf32>
    %195 = vector.shape_cast %194 : vector<1x1x16x16xf32> to vector<16x16xf32>
    %196 = vector.shape_cast %193 : vector<16x16xf32> to vector<1x1x16x16xf32>
    tpu.vector_store %arg3[%c0_194, %c2_195, %c0_196, %c0_197], %196 {strides = array<i32>} : memref<1x4x16x16xf32, #tpu.memory_space<vmem>>, vector<1x1x16x16xf32>,
    %c0_198 = arith.constant 0 : index
    %c2_199 = arith.constant 2 : index
    %c0_200 = arith.constant 0 : index
    %c0_201 = arith.constant 0 : index
    %197 = vector.load %arg4[%c0_198, %c2_199, %c0_200, %c0_201] : memref<2x4x16x16xf32, #tpu.memory_space<vmem>>, vector<1x1x16x16xf32>
    %198 = vector.shape_cast %197 : vector<1x1x16x16xf32> to vector<16x16xf32>
    %199 = arith.addf %198, %193 : vector<16x16xf32>
    %c0_202 = arith.constant 0 : index
    %c2_203 = arith.constant 2 : index
    %c0_204 = arith.constant 0 : index
    %c0_205 = arith.constant 0 : index
    %200 = vector.load %arg4[%c0_202, %c2_203, %c0_204, %c0_205] : memref<2x4x16x16xf32, #tpu.memory_space<vmem>>, vector<1x1x16x16xf32>
    %201 = vector.shape_cast %200 : vector<1x1x16x16xf32> to vector<16x16xf32>
    %202 = vector.shape_cast %199 : vector<16x16xf32> to vector<1x1x16x16xf32>
    tpu.vector_store %arg4[%c0_202, %c2_203, %c0_204, %c0_205], %202 {strides = array<i32>} : memref<2x4x16x16xf32, #tpu.memory_space<vmem>>, vector<1x1x16x16xf32>,
    %c1_206 = arith.constant 1 : index
    %c2_207 = arith.constant 2 : index
    %c0_208 = arith.constant 0 : index
    %c0_209 = arith.constant 0 : index
    %203 = vector.load %arg4[%c1_206, %c2_207, %c0_208, %c0_209] : memref<2x4x16x16xf32, #tpu.memory_space<vmem>>, vector<1x1x16x16xf32>
    %204 = vector.shape_cast %203 : vector<1x1x16x16xf32> to vector<16x16xf32>
    %205 = arith.mulf %193, %193 : vector<16x16xf32>
    %206 = arith.addf %204, %205 : vector<16x16xf32>
    %c1_210 = arith.constant 1 : index
    %c2_211 = arith.constant 2 : index
    %c0_212 = arith.constant 0 : index
    %c0_213 = arith.constant 0 : index
    %207 = vector.load %arg4[%c1_210, %c2_211, %c0_212, %c0_213] : memref<2x4x16x16xf32, #tpu.memory_space<vmem>>, vector<1x1x16x16xf32>
    %208 = vector.shape_cast %207 : vector<1x1x16x16xf32> to vector<16x16xf32>
    %209 = vector.shape_cast %206 : vector<16x16xf32> to vector<1x1x16x16xf32>
    tpu.vector_store %arg4[%c1_210, %c2_211, %c0_212, %c0_213], %209 {strides = array<i32>} : memref<2x4x16x16xf32, #tpu.memory_space<vmem>>, vector<1x1x16x16xf32>,
    %c3_214 = arith.constant 3 : index
    %c0_215 = arith.constant 0 : index
    %210 = memref.load %arg1[%c3_214, %c0_215] : memref<4x9xf32, #tpu.memory_space<smem>>
    %c0_216 = arith.constant 0 : index
    %c3_217 = arith.constant 3 : index
    %c0_218 = arith.constant 0 : index
    %c0_219 = arith.constant 0 : index
    %211 = vector.load %arg2[%c0_216, %c3_217, %c0_218, %c0_219] : memref<1x4x18x18xf32, #tpu.memory_space<vmem>>, vector<1x1x16x16xf32>
    %212 = vector.shape_cast %211 : vector<1x1x16x16xf32> to vector<16x16xf32>
    %213 = vector.broadcast %210 : f32 to vector<16x16xf32>
    %214 = arith.mulf %213, %212 : vector<16x16xf32>
    %c3_220 = arith.constant 3 : index
    %c1_221 = arith.constant 1 : index
    %215 = memref.load %arg1[%c3_220, %c1_221] : memref<4x9xf32, #tpu.memory_space<smem>>
    %c0_222 = arith.constant 0 : index
    %c3_223 = arith.constant 3 : index
    %c0_224 = arith.constant 0 : index
    %c1_225 = arith.constant 1 : index
    %216 = vector.load %arg2[%c0_222, %c3_223, %c0_224, %c1_225] : memref<1x4x18x18xf32, #tpu.memory_space<vmem>>, vector<1x1x16x16xf32>
    %217 = vector.shape_cast %216 : vector<1x1x16x16xf32> to vector<16x16xf32>
    %218 = vector.broadcast %215 : f32 to vector<16x16xf32>
    %219 = arith.mulf %218, %217 : vector<16x16xf32>
    %220 = arith.addf %214, %219 : vector<16x16xf32>
    %c3_226 = arith.constant 3 : index
    %c2_227 = arith.constant 2 : index
    %221 = memref.load %arg1[%c3_226, %c2_227] : memref<4x9xf32, #tpu.memory_space<smem>>
    %c0_228 = arith.constant 0 : index
    %c3_229 = arith.constant 3 : index
    %c0_230 = arith.constant 0 : index
    %c2_231 = arith.constant 2 : index
    %222 = vector.load %arg2[%c0_228, %c3_229, %c0_230, %c2_231] : memref<1x4x18x18xf32, #tpu.memory_space<vmem>>, vector<1x1x16x16xf32>
    %223 = vector.shape_cast %222 : vector<1x1x16x16xf32> to vector<16x16xf32>
    %224 = vector.broadcast %221 : f32 to vector<16x16xf32>
    %225 = arith.mulf %224, %223 : vector<16x16xf32>
    %226 = arith.addf %220, %225 : vector<16x16xf32>
    %c3_232 = arith.constant 3 : index
    %c3_233 = arith.constant 3 : index
    %227 = memref.load %arg1[%c3_232, %c3_233] : memref<4x9xf32, #tpu.memory_space<smem>>
    %c0_234 = arith.constant 0 : index
    %c3_235 = arith.constant 3 : index
    %c1_236 = arith.constant 1 : index
    %c0_237 = arith.constant 0 : index
    %228 = vector.load %arg2[%c0_234, %c3_235, %c1_236, %c0_237] : memref<1x4x18x18xf32, #tpu.memory_space<vmem>>, vector<1x1x16x16xf32>
    %229 = vector.shape_cast %228 : vector<1x1x16x16xf32> to vector<16x16xf32>
    %230 = vector.broadcast %227 : f32 to vector<16x16xf32>
    %231 = arith.mulf %230, %229 : vector<16x16xf32>
    %232 = arith.addf %226, %231 : vector<16x16xf32>
    %c3_238 = arith.constant 3 : index
    %c4_239 = arith.constant 4 : index
    %233 = memref.load %arg1[%c3_238, %c4_239] : memref<4x9xf32, #tpu.memory_space<smem>>
    %c0_240 = arith.constant 0 : index
    %c3_241 = arith.constant 3 : index
    %c1_242 = arith.constant 1 : index
    %c1_243 = arith.constant 1 : index
    %234 = vector.load %arg2[%c0_240, %c3_241, %c1_242, %c1_243] : memref<1x4x18x18xf32, #tpu.memory_space<vmem>>, vector<1x1x16x16xf32>
    %235 = vector.shape_cast %234 : vector<1x1x16x16xf32> to vector<16x16xf32>
    %236 = vector.broadcast %233 : f32 to vector<16x16xf32>
    %237 = arith.mulf %236, %235 : vector<16x16xf32>
    %238 = arith.addf %232, %237 : vector<16x16xf32>
    %c3_244 = arith.constant 3 : index
    %c5_245 = arith.constant 5 : index
    %239 = memref.load %arg1[%c3_244, %c5_245] : memref<4x9xf32, #tpu.memory_space<smem>>
    %c0_246 = arith.constant 0 : index
    %c3_247 = arith.constant 3 : index
    %c1_248 = arith.constant 1 : index
    %c2_249 = arith.constant 2 : index
    %240 = vector.load %arg2[%c0_246, %c3_247, %c1_248, %c2_249] : memref<1x4x18x18xf32, #tpu.memory_space<vmem>>, vector<1x1x16x16xf32>
    %241 = vector.shape_cast %240 : vector<1x1x16x16xf32> to vector<16x16xf32>
    %242 = vector.broadcast %239 : f32 to vector<16x16xf32>
    %243 = arith.mulf %242, %241 : vector<16x16xf32>
    %244 = arith.addf %238, %243 : vector<16x16xf32>
    %c3_250 = arith.constant 3 : index
    %c6_251 = arith.constant 6 : index
    %245 = memref.load %arg1[%c3_250, %c6_251] : memref<4x9xf32, #tpu.memory_space<smem>>
    %c0_252 = arith.constant 0 : index
    %c3_253 = arith.constant 3 : index
    %c2_254 = arith.constant 2 : index
    %c0_255 = arith.constant 0 : index
    %246 = vector.load %arg2[%c0_252, %c3_253, %c2_254, %c0_255] : memref<1x4x18x18xf32, #tpu.memory_space<vmem>>, vector<1x1x16x16xf32>
    %247 = vector.shape_cast %246 : vector<1x1x16x16xf32> to vector<16x16xf32>
    %248 = vector.broadcast %245 : f32 to vector<16x16xf32>
    %249 = arith.mulf %248, %247 : vector<16x16xf32>
    %250 = arith.addf %244, %249 : vector<16x16xf32>
    %c3_256 = arith.constant 3 : index
    %c7_257 = arith.constant 7 : index
    %251 = memref.load %arg1[%c3_256, %c7_257] : memref<4x9xf32, #tpu.memory_space<smem>>
    %c0_258 = arith.constant 0 : index
    %c3_259 = arith.constant 3 : index
    %c2_260 = arith.constant 2 : index
    %c1_261 = arith.constant 1 : index
    %252 = vector.load %arg2[%c0_258, %c3_259, %c2_260, %c1_261] : memref<1x4x18x18xf32, #tpu.memory_space<vmem>>, vector<1x1x16x16xf32>
    %253 = vector.shape_cast %252 : vector<1x1x16x16xf32> to vector<16x16xf32>
    %254 = vector.broadcast %251 : f32 to vector<16x16xf32>
    %255 = arith.mulf %254, %253 : vector<16x16xf32>
    %256 = arith.addf %250, %255 : vector<16x16xf32>
    %c3_262 = arith.constant 3 : index
    %c8_263 = arith.constant 8 : index
    %257 = memref.load %arg1[%c3_262, %c8_263] : memref<4x9xf32, #tpu.memory_space<smem>>
    %c0_264 = arith.constant 0 : index
    %c3_265 = arith.constant 3 : index
    %c2_266 = arith.constant 2 : index
    %c2_267 = arith.constant 2 : index
    %258 = vector.load %arg2[%c0_264, %c3_265, %c2_266, %c2_267] : memref<1x4x18x18xf32, #tpu.memory_space<vmem>>, vector<1x1x16x16xf32>
    %259 = vector.shape_cast %258 : vector<1x1x16x16xf32> to vector<16x16xf32>
    %260 = vector.broadcast %257 : f32 to vector<16x16xf32>
    %261 = arith.mulf %260, %259 : vector<16x16xf32>
    %262 = arith.addf %256, %261 : vector<16x16xf32>
    %c0_268 = arith.constant 0 : index
    %c3_269 = arith.constant 3 : index
    %c0_270 = arith.constant 0 : index
    %c0_271 = arith.constant 0 : index
    %263 = vector.load %arg3[%c0_268, %c3_269, %c0_270, %c0_271] : memref<1x4x16x16xf32, #tpu.memory_space<vmem>>, vector<1x1x16x16xf32>
    %264 = vector.shape_cast %263 : vector<1x1x16x16xf32> to vector<16x16xf32>
    %265 = vector.shape_cast %262 : vector<16x16xf32> to vector<1x1x16x16xf32>
    tpu.vector_store %arg3[%c0_268, %c3_269, %c0_270, %c0_271], %265 {strides = array<i32>} : memref<1x4x16x16xf32, #tpu.memory_space<vmem>>, vector<1x1x16x16xf32>,
    %c0_272 = arith.constant 0 : index
    %c3_273 = arith.constant 3 : index
    %c0_274 = arith.constant 0 : index
    %c0_275 = arith.constant 0 : index
    %266 = vector.load %arg4[%c0_272, %c3_273, %c0_274, %c0_275] : memref<2x4x16x16xf32, #tpu.memory_space<vmem>>, vector<1x1x16x16xf32>
    %267 = vector.shape_cast %266 : vector<1x1x16x16xf32> to vector<16x16xf32>
    %268 = arith.addf %267, %262 : vector<16x16xf32>
    %c0_276 = arith.constant 0 : index
    %c3_277 = arith.constant 3 : index
    %c0_278 = arith.constant 0 : index
    %c0_279 = arith.constant 0 : index
    %269 = vector.load %arg4[%c0_276, %c3_277, %c0_278, %c0_279] : memref<2x4x16x16xf32, #tpu.memory_space<vmem>>, vector<1x1x16x16xf32>
    %270 = vector.shape_cast %269 : vector<1x1x16x16xf32> to vector<16x16xf32>
    %271 = vector.shape_cast %268 : vector<16x16xf32> to vector<1x1x16x16xf32>
    tpu.vector_store %arg4[%c0_276, %c3_277, %c0_278, %c0_279], %271 {strides = array<i32>} : memref<2x4x16x16xf32, #tpu.memory_space<vmem>>, vector<1x1x16x16xf32>,
    %c1_280 = arith.constant 1 : index
    %c3_281 = arith.constant 3 : index
    %c0_282 = arith.constant 0 : index
    %c0_283 = arith.constant 0 : index
    %272 = vector.load %arg4[%c1_280, %c3_281, %c0_282, %c0_283] : memref<2x4x16x16xf32, #tpu.memory_space<vmem>>, vector<1x1x16x16xf32>
    %273 = vector.shape_cast %272 : vector<1x1x16x16xf32> to vector<16x16xf32>
    %274 = arith.mulf %262, %262 : vector<16x16xf32>
    %275 = arith.addf %273, %274 : vector<16x16xf32>
    %c1_284 = arith.constant 1 : index
    %c3_285 = arith.constant 3 : index
    %c0_286 = arith.constant 0 : index
    %c0_287 = arith.constant 0 : index
    %276 = vector.load %arg4[%c1_284, %c3_285, %c0_286, %c0_287] : memref<2x4x16x16xf32, #tpu.memory_space<vmem>>, vector<1x1x16x16xf32>
    %277 = vector.shape_cast %276 : vector<1x1x16x16xf32> to vector<16x16xf32>
    %278 = vector.shape_cast %275 : vector<16x16xf32> to vector<1x1x16x16xf32>
    tpu.vector_store %arg4[%c1_284, %c3_285, %c0_286, %c0_287], %278 {strides = array<i32>} : memref<2x4x16x16xf32, #tpu.memory_space<vmem>>, vector<1x1x16x16xf32>,
    return
  }
  func.func @transform_0(%arg0: i32) -> (i32, i32) {
    %c0_i32 = arith.constant 0 : i32
    %c0_i32_0 = arith.constant 0 : i32
    %c0_i32_1 = arith.constant 0 : i32
    return %c0_i32, %c0_i32_0 : i32, i32
  }
  func.func @transform_1(%arg0: i32) -> (i32, i32, i32, i32) {
    %c0_i32 = arith.constant 0 : i32
    %c0_i32_0 = arith.constant 0 : i32
    %c0_i32_1 = arith.constant 0 : i32
    %c0_i32_2 = arith.constant 0 : i32
    return %arg0, %c0_i32, %c0_i32_0, %c0_i32_1 : i32, i32, i32, i32
  }
  func.func @transform_2(%arg0: i32) -> (i32, i32, i32, i32) {
    %c0_i32 = arith.constant 0 : i32
    %c0_i32_0 = arith.constant 0 : i32
    %c0_i32_1 = arith.constant 0 : i32
    %c0_i32_2 = arith.constant 0 : i32
    return %arg0, %c0_i32, %c0_i32_0, %c0_i32_1 : i32, i32, i32, i32
  }
  func.func @transform_3(%arg0: i32) -> (i32, i32, i32, i32) {
    %c0_i32 = arith.constant 0 : i32
    %c0_i32_0 = arith.constant 0 : i32
    %c0_i32_1 = arith.constant 0 : i32
    %c0_i32_2 = arith.constant 0 : i32
    %c0_i32_3 = arith.constant 0 : i32
    return %c0_i32, %c0_i32_0, %c0_i32_1, %c0_i32_2 : i32, i32, i32, i32
  }
}

</mosaic_0001>

<bundles_post_ra>
// kernel: dsconv_forward.4
= control target key start
LH: loop header
LB: loop body
LE: loop exit
PB: predicated region body
PF: predicated region fallthrough
CT: control target
= control target key end

     0   :  { %s492_s15 = smov 0   ;;  %s494_s16 = smov 0   ;;  %s567_s0 = inlined_call_operand.vmem [shape: f32[2,4,256], index: 0, kind: input, shape index: {}]   ;;  %s568_s1 = inlined_call_operand.vmem [shape: f32[4,1], index: 1, kind: input, shape index: {}]   ;;  %s569_s2 = inlined_call_operand.vmem [shape: f32[4,1], index: 2, kind: input, shape index: {}]   ;;  %s570_s3 = inlined_call_operand.vmem [shape: f32[8,4], index: 3, kind: input, shape index: {}]   ;;  %s571_s4 = inlined_call_operand.vmem [shape: f32[2,8,256], index: 4, kind: output, shape index: {}]  }
   0x1   :  { %s496_s17 = smov 0  }
   0x2 LB: > { %s26_s18 = sadd.s32 1, %s457_s16  ;;  %p395_p0 = scmp.ge.s32.totalorder %s461_s17, 1  ;;  %s461_s17 = sphi %s496_s17, %s14_s17   ;;  %s457_s16 = sphi %s494_s16, %s573_s16   ;;  %s453_s15 = sphi %s492_s15, %s572_s15  }
   0x3   : > { %p28_p1 = scmp.ge.s32.totalorder %s26_s18, 2  ;;  %p176_p2 = scmp.lt.s32.totalorder %s461_s17, 3 }
   0x5   : > { %s575_s18 = smov (%p28_p1, %s26_s18), 0  ;;  %p177_p3 = pnand %p395_p0, %p176_p2 }
   0x6   : > { %p202_p4 = scmp.lt.s32.totalorder (!%p177_p3), %s453_s15, 1  ;;  %p211_p5 = scmp.eq.s32.totalorder (!%p177_p3), %s453_s15, 0 }
   0x7   : > { %180 = sbr.rel (%p177_p3) target bundleno = 385 (0x181), region = 36 }
   0xe   : > { %s577_s15 = smov (!%p202_p4, %s453_s15), 1  ;;  %216 = sbr.rel (!%p211_p5) target bundleno = 21 (0x15), region = 40 }
   0xf   : > { %s408_s19 = sshll.u32 %s577_s15, 3  ;;  %v463_v0 = vmov (%p211_p5), 0.0  }
  0x10   : > { %s209_s22 = scalar_lea.vmem %s567_s0, %s408_s19  ;;  %217 = vst [vmem:[%s571_s4] sm:$0xff] (%p211_p5), %v463_v0  ;;  %218 = vst [vmem:[%s571_s4 + $0x8] sm:$0xff] (%p211_p5), %v463_v0 }
  0x11   : > { %219 = vst [vmem:[%s571_s4 + $0x10] sm:$0xff] (%p211_p5), %v463_v0  ;;  %220 = vst [vmem:[%s571_s4 + $0x18] sm:$0xff] (%p211_p5), %v463_v0 }
  0x15 PF: > { %v222_v1 = vld [vmem:[%s568_s1] sm:$0xf]  ;;  %v464_v2 = vmov 0   ;;  %v465_v4 = vmov 0.0   ;;  %v466_v5 = vmov 839922192   ;;  %v230_v7 = vlaneseq }
  0x16   : > { %438 = vset.pattern.permute.xlu0 %v464_v2  ;;  %v236_v3 = vld [vmem:[%s569_s2] sm:$0xf]  ;;  %328 = vmatprep.mubr.f32.mxu0 %v465_v4  ;;  %v228_v6 = vunpack.c.l.s4 %v466_v5  ;;  %vm259_vm0 = vcmask 1043456   ;;  %vm255_vm1 = vcmask 31744  }
  0x17   : > { %225 = vperm.xlu0 %438, %v222_v1   ;;  %v231_v9 = vshrl.u32 %v230_v7, 7  ;;  %v221_v13 = vld [vmem:[%s209_s22] sm:$0xff]  ;;  %v336_v23 = vld [vmem:[%s571_s4 + $0x8] sm:$0xff] }
  0x18   : > { %v229_v8 = vunpack.c.0.s8 %v228_v6  ;;  %v252_v21 = vld [vmem:[%s570_s3] sm:$0xff]  ;;  %v402_v25 = vld [vmem:[%s571_s4 + $0x10] sm:$0xff]  ;;  %v403_v29 = vld [vmem:[%s571_s4 + $0x18] sm:$0xff] }
  0x19   : > { %v335_v22 = vld [vmem:[%s571_s4] sm:$0xff] }
  0x1a   : > { %v232_v10 = vsub.s32 %v229_v8, %v231_v9 }
  0x1b   : > { %239 = vperm.xlu0 %438, %v236_v3  }
  0x96   : > { %v226_v11 = vpop.permute.xlu0 %225 }
  0x97   : > { %v233_v12 = vrot.slane %v226_v11, %v232_v10 }
  0x99   : > { %v235_v15 = vmul.f32 %v233_v12, %v221_v13 }
  0x9a   : > { %v240_v14 = vpop.permute.xlu0 %239 }
  0x9b   : > { %v247_v16 = vrot.slane %v240_v14, %v232_v10 }
  0x9d   : > { %v249_v17 = vadd.f32 %v247_v16, %v235_v15 }
  0x9f   : > { %v250_v18 = vmax.f32 %v249_v17, 0.0 }
  0xa1   : > { %v251_v19 = vmin.f32 %v250_v18, 6.0 }
  0xa3   : > { %v254_v20 = vcombine.high %v251_v19, %v251_v19 }
  0xa5   : > { %399 = vmatprep.subr.msk.mxu0 %vm259_vm0, %v254_v20 }
  0xa6   : > { %400 = vmatpush1.msk.msra.mxu0 %vm259_vm0, %v251_v19 }
  0xa7   : > { %401 = vmatmul.mubr.msk.f32.vlgmr.msra.gmra.mrb[0].mxu0 %vm255_vm1, %v252_v21 }
 0x17a   : > { %v330_v24 = vpop.f32.mrb[0].mxu0 }
 0x17b   : > { %v337_v26 = vadd.f32 %v335_v22, %v330_v24  ;;  %v344_v27 = vmul.f32 %v330_v24, %v330_v24  ;;  %v332_v28 = vpop.f32.mrb[1].mxu0 }
 0x17c   : > { %v338_v30 = vadd.f32 %v336_v23, %v332_v28  ;;  %v345_v31 = vmul.f32 %v332_v28, %v332_v28 }
 0x17d   : > { %339 = vst [vmem:[%s571_s4] sm:$0xff] %v337_v26  ;;  %v346_v32 = vadd.f32 %v402_v25, %v344_v27 }
 0x17e   : > { %340 = vst [vmem:[%s571_s4 + $0x8] sm:$0xff] %v338_v30  ;;  %v347_v33 = vadd.f32 %v403_v29, %v345_v31 }
 0x17f   : > { %404 = vst [vmem:[%s571_s4 + $0x10] sm:$0xff] %v346_v32 }
 0x180   : > { %405 = vst [vmem:[%s571_s4 + $0x18] sm:$0xff] %v347_v33 }
 0x181 PF: > { %s14_s17 = sadd.s32 1, %s461_s17   ;;  %s572_s15 = smov %s457_s16 }
 0x182   : > { %p11_p6 = scmp.ge.s32.totalorder %s14_s17, 4   ;;  %s573_s16 = smov %s575_s18 }
 0x184   :  { %13 = sbr.rel (!%p11_p6) target bundleno = 2 (0x2), region = 67 }

// kernel: dsconv_forward.5
= control target key start
LH: loop header
LB: loop body
LE: loop exit
PB: predicated region body
PF: predicated region fallthrough
CT: control target
= control target key end

     0   :  { %s617_s21 = smov 0   ;;  %s619_s22 = smov 0   ;;  %s669_s0 = inlined_call_operand.vmem [shape: f32[2,4,256], index: 0, kind: input, shape index: {}]   ;;  %s670_s1 = inlined_call_operand.vmem [shape: f32[4,1], index: 1, kind: input, shape index: {}]   ;;  %s671_s2 = inlined_call_operand.vmem [shape: f32[4,1], index: 2, kind: input, shape index: {}]   ;;  %s672_s3 = inlined_call_operand.vmem [shape: f32[8,4], index: 3, kind: input, shape index: {}]   ;;  %s673_s4 = inlined_call_operand.vmem [shape: f32[8,1], index: 4, kind: input, shape index: {}]   ;;  %s674_s5 = inlined_call_operand.vmem [shape: f32[8,1], index: 5, kind: input, shape index: {}]   ;;  %s675_s6 = inlined_call_operand.vmem [shape: f32[2,8,256], index: 6, kind: output, shape index: {}]  }
   0x1   :  { %s621_s23 = smov 0  }
   0x2 LB: > { %s28_s24 = sadd.s32 1, %s573_s22  ;;  %p514_p0 = scmp.ge.s32.totalorder %s577_s23, 1  ;;  %s577_s23 = sphi %s621_s23, %s16_s23   ;;  %s573_s22 = sphi %s619_s22, %s677_s22   ;;  %s569_s21 = sphi %s617_s21, %s676_s21  }
   0x3   : > { %p30_p1 = scmp.ge.s32.totalorder %s28_s24, 2  ;;  %p233_p2 = scmp.lt.s32.totalorder %s577_s23, 3 }
   0x5   : > { %s679_s24 = smov (%p30_p1, %s28_s24), 0  ;;  %p234_p3 = pnand %p514_p0, %p233_p2 }
   0x6   : > { %v292_v0 = vld [vmem:[%s670_s1] sm:$0xf] (!%p234_p3)  ;;  %v579_v1 = vmov (!%p234_p3), 0   ;;  %v580_v3 = vmov (!%p234_p3), 0.0   ;;  %p272_p4 = scmp.lt.s32.totalorder (!%p234_p3), %s569_s21, 1  ;;  %v300_v8 = vlaneseq (!%p234_p3)  ;;  %vm329_vm0 = vcmask (!%p234_p3), 1043456  }
   0x7   : > { %237 = sbr.rel (%p234_p3) target bundleno = 370 (0x172), region = 44  ;;  %553 = vset.pattern.permute.xlu0 (!%p234_p3), %v579_v1  ;;  %554 = vset.pattern.permute.xlu1 (!%p234_p3), %v579_v1  ;;  %v306_v2 = vld [vmem:[%s671_s2] sm:$0xf] (!%p234_p3)  ;;  %v581_v6 = vmov (!%p234_p3), 839922192   ;;  %vm325_vm1 = vcmask (!%p234_p3), 31744  }
   0x8   : > { %295 = vperm.xlu0 (!%p234_p3), %553, %v292_v0   ;;  %398 = vmatprep.mubr.f32.mxu0 (!%p234_p3), %v580_v3  ;;  %v405_v4 = vld [vmem:[%s673_s4] sm:$0xff] (!%p234_p3)  ;;  %v298_v7 = vunpack.c.l.s4 (!%p234_p3), %v581_v6  ;;  %v301_v10 = vshrl.u32 (!%p234_p3), %v300_v8, 7 }
   0x9   : > { %408 = vperm.xlu1 (!%p234_p3), %554, %v405_v4   ;;  %v413_v5 = vld [vmem:[%s674_s5] sm:$0xff] (!%p234_p3) }
   0xa   : > { %v299_v9 = vunpack.c.0.s8 (!%p234_p3), %v298_v7  ;;  %v322_v22 = vld [vmem:[%s672_s3] sm:$0xff] (!%p234_p3) }
   0xc   : > { %309 = vperm.xlu0 (!%p234_p3), %553, %v306_v2   ;;  %v302_v11 = vsub.s32 (!%p234_p3), %v299_v9, %v301_v10 }
   0xd   : > { %416 = vperm.xlu1 (!%p234_p3), %554, %v413_v5  }
   0xe   : > { %s681_s21 = smov (!%p272_p4, %s569_s21), 1 }
   0xf   : > { %s524_s9 = sshll.u32 %s681_s21, 3  ;;  %s525_s15 = sshll.u32 %s681_s21, 4 }
  0x10   : > { %s279_s12 = scalar_lea.vmem %s669_s0, %s524_s9  ;;  %s289_s18 = scalar_lea.vmem %s675_s6, %s525_s15 }
  0x11   : > { %v291_v14 = vld [vmem:[%s279_s12] sm:$0xff] }
  0x87   : > { %v296_v12 = vpop.permute.xlu0 %295 }
  0x88   : > { %v303_v13 = vrot.slane %v296_v12, %v302_v11  ;;  %v409_v23 = vpop.permute.xlu1 %408 }
  0x8a   : > { %v305_v16 = vmul.f32 %v303_v13, %v291_v14 }
  0x8b   : > { %v310_v15 = vpop.permute.xlu0 %309 }
  0x8c   : > { %v317_v17 = vrot.slane %v310_v15, %v302_v11  ;;  %v417_v27 = vpop.permute.xlu1 %416 }
  0x8e   : > { %v319_v18 = vadd.f32 %v317_v17, %v305_v16 }
  0x90   : > { %v320_v19 = vmax.f32 %v319_v18, 0.0 }
  0x92   : > { %v321_v20 = vmin.f32 %v320_v19, 6.0 }
  0x94   : > { %v324_v21 = vcombine.high %v321_v20, %v321_v20 }
  0x96   : > { %519 = vmatprep.subr.msk.mxu0 %vm329_vm0, %v324_v21 }
  0x97   : > { %520 = vmatpush1.msk.msra.mxu0 %vm329_vm0, %v321_v20 }
  0x98   : > { %521 = vmatmul.mubr.msk.f32.vlgmr.msra.gmra.mrb[0].mxu0 %vm325_vm1, %v322_v22 }
 0x16b   : > { %v400_v24 = vpop.f32.mrb[0].mxu0 }
 0x16c   : > { %v411_v25 = vmul.f32 %v409_v23, %v400_v24  ;;  %v402_v26 = vpop.f32.mrb[1].mxu0 }
 0x16d   : > { %v412_v28 = vmul.f32 %v409_v23, %v402_v26 }
 0x16e   : > { %v419_v29 = vadd.f32 %v417_v27, %v411_v25 }
 0x16f   : > { %v420_v30 = vadd.f32 %v417_v27, %v412_v28 }
 0x170   : > { %421 = vst [vmem:[%s289_s18] sm:$0xff] %v419_v29 }
 0x171   : > { %422 = vst [vmem:[%s289_s18 + $0x8] sm:$0xff] %v420_v30 }
 0x172 PF: > { %s16_s23 = sadd.s32 1, %s577_s23   ;;  %s676_s21 = smov %s573_s22 }
 0x173   : > { %p13_p5 = scmp.ge.s32.totalorder %s16_s23, 4   ;;  %s677_s22 = smov %s679_s24 }
 0x175   :  { %15 = sbr.rel (!%p13_p5) target bundleno = 2 (0x2), region = 74 }

// kernel: dsconv_forward.3
= control target key start
LH: loop header
LB: loop body
LE: loop exit
PB: predicated region body
PF: predicated region fallthrough
CT: control target
= control target key end

     0   :  { %9 = vsyncpa [#allocation3], 0  ;;  %s954_s12 = smov 0   ;;  %s1415_s0 = inlined_call_operand.vmem [shape: f32[4,9], index: 0, kind: input, shape index: {}]   ;;  %s1416_s1 = inlined_call_operand.vmem [shape: f32[2,4,18,18], index: 1, kind: input, shape index: {}]   ;;  %s1417_s2 = inlined_call_operand.vmem [shape: f32[2,4,16,16], index: 2, kind: output, shape index: {0}]   ;;  %s1418_s3 = inlined_call_operand.vmem [shape: f32[2,4,16,16], index: 3, kind: output, shape index: {1}]  }
   0x1 LB: > { %s960_s13 = sadd.s32 4294967295, %s928_s12   ;;  %p781_p0 = scmp.ge.s32.totalorder %s928_s12, 1  ;;  %s928_s12 = sphi %s954_s12, %s15_s12  }
   0x2   : > { %p114_p1 = scmp.lt.s32.totalorder %s928_s12, 3  ;;  %s127_s16 = sshll.u32 %s1415_s0, 4  ;;  %s128_s16 = int_to_ptr.vmem [resolvable:$true] %s127_s16 }
   0x3   : > { %p889_p4 = scmp.eq.s32.totalorder %s960_s13, 0  ;;  %s903_s18 = scalar_lea.vmem %s128_s16, 64 }
   0x4   : > { %p968_p3 = pnand %p781_p0, %p114_p1  ;;  %p904_p7 = scmp.ne.s32.totalorder %s128_s16, %s903_s18 }
   0x5   : > { %p911_p11 = scmp.lt.s32.totalorder %s128_s16, %s128_s16  ;;  %p912_p12 = scmp.lt.s32.totalorder %s903_s18, %s903_s18 }
   0x6   : > { %p885_p5 = pneg %p968_p3 }
   0x7   : > { %p913_p13 = por %p912_p12, %p911_p11 }
   0x8   : > { %p886_p6 = pnand %p889_p4, %p885_p5 }
   0xa   : > { %p905_p8 = pneg %p886_p6 }
   0xc   : > { %p906_p9 = pnand %p905_p8, %p904_p7 }
   0xe   : > { %p907_p10 = pneg %p906_p9 }
  0x10   : > { %p914_p2 = pnand %p913_p13, %p907_p10 }
  0x12   : > { %917 = shalt.err (!%p914_p2)
}
  0x13   : > { %s930_s19 = smov [#allocation2]   ;;  %148 = sbr.rel (%p968_p3) target bundleno = 264 (0x108), region = 28 }
  0x14   : > { %888 = dma.vmem_to_smem (!%p886_p6), %s128_s16, 64, %s930_s19, [#allocation3]  }
  0x1a   : > { %923 = dma.done.wait (%p889_p4), [#allocation3], 64  }
  0x1b   : > { %925 = vsyncadd (%p889_p4), [#allocation3], 4294967232 }
  0x1c   : > { %154 = sfence }
  0x1d   : > { %p173_p0 = scmp.lt.s32.totalorder %s960_s13, 1  ;;  %p1420_p1 = scmp.ne.s32.totalorder %s960_s13, 0 }
  0x1e   : > { %vm187_vm0 = vcmask (!%p1420_p1), 130048   ;;  %v931_v0 = vmov (!%p1420_p1), 0.0  }
  0x1f   : > { %s174_s20 = scalar_select %p173_p0, %s960_s13, 1 }
  0x20   : > { %186 = sbr.rel (%p1420_p1) target bundleno = 40 (0x28), region = 36  ;;  %188 = vst.msk [vmem:[%s1418_s3] sm:$0xff] (!%p1420_p1), %vm187_vm0, %v931_v0  ;;  %189 = vst.msk [vmem:[%s1418_s3 + $0x8] sm:$0xff] (!%p1420_p1), %vm187_vm0, %v931_v0 }
  0x21   : > { %s880_s21 = smul.u32 96, %s174_s20  ;;  %s879_s22 = sshll.u32 %s174_s20, 6  ;;  %190 = vst.msk [vmem:[%s1418_s3 + $0x10] sm:$0xff] (!%p1420_p1), %vm187_vm0, %v931_v0  ;;  %191 = vst.msk [vmem:[%s1418_s3 + $0x18] sm:$0xff] (!%p1420_p1), %vm187_vm0, %v931_v0 }
  0x22   : > { %s988_s25 = scalar_lea.vmem %s1417_s2, %s879_s22  ;;  %192 = vst.msk [vmem:[%s1418_s3 + $0x20] sm:$0xff] (!%p1420_p1), %vm187_vm0, %v931_v0  ;;  %193 = vst.msk [vmem:[%s1418_s3 + $0x28] sm:$0xff] (!%p1420_p1), %vm187_vm0, %v931_v0 }
  0x23   : > { %s993_s28 = scalar_lea.vmem %s1416_s1, %s880_s21  ;;  %194 = vst.msk [vmem:[%s1418_s3 + $0x30] sm:$0xff] (!%p1420_p1), %vm187_vm0, %v931_v0  ;;  %195 = vst.msk [vmem:[%s1418_s3 + $0x38] sm:$0xff] (!%p1420_p1), %vm187_vm0, %v931_v0 }
  0x24   : > { %196 = vst.msk [vmem:[%s1418_s3 + $0x40] sm:$0xff] (!%p1420_p1), %vm187_vm0, %v931_v0  ;;  %197 = vst.msk [vmem:[%s1418_s3 + $0x48] sm:$0xff] (!%p1420_p1), %vm187_vm0, %v931_v0 }
  0x25   : > { %198 = vst.msk [vmem:[%s1418_s3 + $0x50] sm:$0xff] (!%p1420_p1), %vm187_vm0, %v931_v0  ;;  %199 = vst.msk [vmem:[%s1418_s3 + $0x58] sm:$0xff] (!%p1420_p1), %vm187_vm0, %v931_v0 }
  0x26   : > { %200 = vst.msk [vmem:[%s1418_s3 + $0x60] sm:$0xff] (!%p1420_p1), %vm187_vm0, %v931_v0  ;;  %201 = vst.msk [vmem:[%s1418_s3 + $0x68] sm:$0xff] (!%p1420_p1), %vm187_vm0, %v931_v0 }
  0x27   : > { %202 = vst.msk [vmem:[%s1418_s3 + $0x70] sm:$0xff] %vm187_vm0, %v931_v0  ;;  %203 = vst.msk [vmem:[%s1418_s3 + $0x78] sm:$0xff] %vm187_vm0, %v931_v0 }
  0x28 PF: > { %s791_s10 = sld [smem:[#allocation2 + $0x2]]  ;;  %s790_s11 = sld [smem:[#allocation2 + $0x1]]  ;;  %v1062_v1 = vld [vmem:[%s993_s28] sm:$0xff]  ;;  %v1065_v2 = vld [vmem:[%s993_s28 + $0x8] sm:$0xff]  ;;  %v1090_v17 = vld [vmem:[%s993_s28 + $0x18] sm:$0xff]  ;;  %vm310_vm1 = vcmask 130048  }
  0x29   : > { %s793_s13 = sld [smem:[#allocation2 + $0x4]]  ;;  %s794_s14 = sld [smem:[#allocation2 + $0x5]]  ;;  %v1074_v9 = vld [vmem:[%s993_s28 + $0x9] sm:$0xff]  ;;  %v1077_v11 = vld [vmem:[%s993_s28 + $0x1] sm:$0xff]  ;;  %v1116_v30 = vld [vmem:[%s993_s28 + $0x38] sm:$0xff] }
  0x2a   : > { %s932_s15 = smov 126   ;;  %s933_s16 = smov 127   ;;  %v1093_v19 = vld [vmem:[%s993_s28 + $0x2] sm:$0xff]  ;;  %v1103_v23 = vld [vmem:[%s993_s28 + $0x30] sm:$0xff]  ;;  %v1138_v43 = vld [vmem:[%s993_s28 + $0x19] sm:$0xff] }
  0x2b   : > { %s805_s17 = sld [smem:[#allocation2 + $0x81]]  ;;  %s1079_s18 = sld [smem:[#allocation2 + $0x7]]  ;;  %v1106_v25 = vld [vmem:[%s993_s28 + $0x20] sm:$0xff]  ;;  %v1113_v28 = vld [vmem:[%s993_s28 + $0x48] sm:$0xff]  ;;  %v1123_v34 = vld [vmem:[%s993_s28 + $0x50] sm:$0xff] }
  0x2c   : > { %s830_s19 = sld [smem:[#allocation2 + $0x101]]  ;;  %s806_s21 = sld [smem:[#allocation2 + $0x82]]  ;;  %v1145_v47 = vld [vmem:[%s993_s28 + $0x31] sm:$0xff]  ;;  %v1148_v49 = vld [vmem:[%s993_s28 + $0x21] sm:$0xff]  ;;  %v1155_v52 = vld [vmem:[%s993_s28 + $0x49] sm:$0xff] }
  0x2d   : > { %s855_s20 = sld [smem:[#allocation2 + $0x181]]  ;;  %s831_s22 = sld [smem:[#allocation2 + $0x102]]  ;;  %v1158_v54 = vld [vmem:[%s993_s28 + $0x39] sm:$0xff]  ;;  %v1165_v58 = vld [vmem:[%s993_s28 + $0x51] sm:$0xff] }
  0x2e   : > { %v225_v3 = vstv %s791_s10  ;;  %v211_v5 = vstv %s790_s11  ;;  %s856_s23 = sld [smem:[#allocation2 + $0x182]]  ;;  %s810_s24 = sld [smem:[#allocation2 + $0x84]] }
  0x2f   : > { %v226_v4 = vmul.f32 %v225_v3, %v1062_v1  ;;  %v212_v6 = vmul.f32 %v211_v5, %v1062_v1  ;;  %v227_v7 = vmul.f32 %v225_v3, %v1065_v2  ;;  %v213_v8 = vmul.f32 %v211_v5, %v1065_v2  ;;  %s835_s26 = sld [smem:[#allocation2 + $0x104]]  ;;  %s811_s29 = sld [smem:[#allocation2 + $0x85]]  ;;  %v1180_v5 = vld [vmem:[%s993_s28 + $0xa] sm:$0xff] }
  0x30   : > { %v247_v10 = vstv %s793_s13  ;;  %v261_v14 = vstv %s794_s14  ;;  %s860_s27 = sld [smem:[#allocation2 + $0x184]]  ;;  %s836_s30 = sld [smem:[#allocation2 + $0x105]] }
  0x31   : > { %230 = vrot.lane.b32.xlu1 %v226_v4, %s932_s15  ;;  %216 = vrot.lane.b32.xlu0 %v212_v6, %s933_s16  ;;  %v249_v12 = vmul.f32 %v247_v10, %v1074_v9  ;;  %v248_v13 = vmul.f32 %v247_v10, %v1077_v11  ;;  %v263_v15 = vmul.f32 %v261_v14, %v1074_v9  ;;  %v336_v18 = vstv %s805_s17  ;;  %s861_s4 = sld [smem:[#allocation2 + $0x185]]  ;;  %s815_s5 = sld [smem:[#allocation2 + $0x87]] }
  0x32   : > { %v262_v16 = vmul.f32 %v261_v14, %v1077_v11  ;;  %v283_v20 = vstv %s1079_s18  ;;  %v337_v21 = vmul.f32 %v1090_v17, %v336_v18  ;;  %v462_v24 = vstv %s830_s19  ;;  %s840_s6 = sld [smem:[#allocation2 + $0x107]]  ;;  %s797_s8 = sld [smem:[#allocation2 + $0x8]] }
  0x33   : > { %v284_v22 = vmul.f32 %v283_v20, %v1093_v19  ;;  %v463_v26 = vmul.f32 %v1103_v23, %v462_v24  ;;  %v338_v27 = vmul.f32 %v1106_v25, %v336_v18  ;;  %v588_v29 = vstv %s855_s20  ;;  %s865_s7 = sld [smem:[#allocation2 + $0x187]]  ;;  %v1202_v18 = vld [vmem:[%s993_s28 + $0x32] sm:$0xff]  ;;  %s816_s9 = sld [smem:[#allocation2 + $0x88]] }
  0x34   : > { %v589_v31 = vmul.f32 %v1113_v28, %v588_v29  ;;  %v464_v32 = vmul.f32 %v1116_v30, %v462_v24  ;;  %v350_v33 = vstv %s806_s21  ;;  %v590_v36 = vmul.f32 %v1123_v34, %v588_v29  ;;  %s841_s10 = sld [smem:[#allocation2 + $0x108]]  ;;  %s792_s13 = sld [smem:[#allocation2 + $0x3]] }
  0x35   : > { %232 = vrot.lane.b32.xlu1 %v227_v7, %s932_s15  ;;  %218 = vrot.lane.b32.xlu0 %v213_v8, %s933_s16  ;;  %v351_v35 = vmul.f32 %v1090_v17, %v350_v33  ;;  %v476_v37 = vstv %s831_s22  ;;  %v352_v39 = vmul.f32 %v1106_v25, %v350_v33  ;;  %v602_v40 = vstv %s856_s23  ;;  %s204_s11 = sld [smem:[#allocation2]]  ;;  %s795_s14 = sld [smem:[#allocation2 + $0x6]] }
  0x36   : > { %v477_v38 = vmul.f32 %v1103_v23, %v476_v37  ;;  %v603_v41 = vmul.f32 %v1113_v28, %v602_v40  ;;  %v478_v42 = vmul.f32 %v1116_v30, %v476_v37  ;;  %v372_v44 = vstv %s810_s24  ;;  %v1189_v8 = vld [vmem:[%s993_s28 + $0x22] sm:$0xff]  ;;  %s807_s17 = sld [smem:[#allocation2 + $0x83]]  ;;  %s1248_s18 = sld [smem:[#allocation2 + $0x180]] }
  0x37   : > { %v373_v45 = vmul.f32 %v1138_v43, %v372_v44  ;;  %v604_v46 = vmul.f32 %v1123_v34, %v602_v40  ;;  %v498_v48 = vstv %s835_s26  ;;  %v374_v51 = vmul.f32 %v1148_v49, %v372_v44  ;;  %s1250_s19 = sld [smem:[#allocation2 + $0x103]]  ;;  %s812_s21 = sld [smem:[#allocation2 + $0x86]] }
  0x38   : > { %v499_v50 = vmul.f32 %v1145_v47, %v498_v48  ;;  %v624_v53 = vstv %s860_s27  ;;  %v500_v56 = vmul.f32 %v1158_v54, %v498_v48  ;;  %v386_v57 = vstv %s811_s29  ;;  %s1253_s20 = sld [smem:[#allocation2 + $0x183]]  ;;  %s837_s22 = sld [smem:[#allocation2 + $0x106]] }
  0x39   : > { %254 = vrot.lane.b32.xlu1 %v249_v12, %s933_s16  ;;  %252 = vrot.lane.b32.xlu0 %v248_v13, %s933_s16  ;;  %v625_v55 = vmul.f32 %v1155_v52, %v624_v53  ;;  %v387_v59 = vmul.f32 %v1138_v43, %v386_v57  ;;  %v626_v60 = vmul.f32 %v1165_v58, %v624_v53  ;;  %v512_v61 = vstv %s836_s30  ;;  %v1192_v12 = vld [vmem:[%s993_s28 + $0x1a] sm:$0xff]  ;;  %s1269_s23 = sld [smem:[#allocation2 + $0x186]] }
  0x3a   : > { %v513_v62 = vmul.f32 %v1145_v47, %v512_v61  ;;  %v388_v63 = vmul.f32 %v1148_v49, %v386_v57  ;;  %v638_v0 = vstv %s861_s4  ;;  %v514_v4 = vmul.f32 %v1158_v54, %v512_v61 }
  0x3b   : > { %v639_v3 = vmul.f32 %v1155_v52, %v638_v0  ;;  %v285_v6 = vmul.f32 %v283_v20, %v1180_v5  ;;  %v640_v7 = vmul.f32 %v1165_v58, %v638_v0  ;;  %v408_v10 = vstv %s815_s5 }
  0x3c   : > { %v410_v13 = vmul.f32 %v1189_v8, %v408_v10  ;;  %v409_v14 = vmul.f32 %v1192_v12, %v408_v10  ;;  %v660_v24 = vstv %s865_s7  ;;  %v241_v48 = vstv %s792_s13 }
  0x3d   : > { %268 = vrot.lane.b32.xlu1 %v263_v15, %s932_s15  ;;  %266 = vrot.lane.b32.xlu0 %v262_v16, %s932_s15  ;;  %v1199_v15 = vld [vmem:[%s993_s28 + $0x3a] sm:$0xff]  ;;  %v534_v16 = vstv %s840_s6 }
  0x3e   : > { %v536_v20 = vmul.f32 %v1199_v15, %v534_v16 }
  0x41   : > { %341 = vrot.lane.b32.xlu1 %v337_v21, %s933_s16  ;;  %288 = vrot.lane.b32.xlu0 %v284_v22, %s933_s16  ;;  %v535_v21 = vmul.f32 %v1202_v18, %v534_v16  ;;  %v1209_v22 = vld [vmem:[%s993_s28 + $0x52] sm:$0xff] }
  0x45   : > { %467 = vrot.lane.b32.xlu1 %v463_v26, %s933_s16  ;;  %343 = vrot.lane.b32.xlu0 %v338_v27, %s933_s16  ;;  %v1212_v26 = vld [vmem:[%s993_s28 + $0x4a] sm:$0xff]  ;;  %v662_v27 = vmul.f32 %v1209_v22, %v660_v24  ;;  %s866_s28 = sld [smem:[#allocation2 + $0x188]] }
  0x46   : > { %v661_v29 = vmul.f32 %v1212_v26, %v660_v24 }
  0x49   : > { %593 = vrot.lane.b32.xlu1 %v589_v31, %s933_s16  ;;  %469 = vrot.lane.b32.xlu0 %v464_v32, %s933_s16  ;;  %v297_v31 = vstv %s797_s8 }
  0x4a   : > { %v299_v32 = vmul.f32 %v297_v31, %v1180_v5  ;;  %v298_v33 = vmul.f32 %v297_v31, %v1093_v19 }
  0x4d   : > { %355 = vrot.lane.b32.xlu1 %v351_v35, %s932_s15  ;;  %595 = vrot.lane.b32.xlu0 %v590_v36, %s933_s16  ;;  %v422_v35 = vstv %s816_s9 }
  0x4e   : > { %v424_v36 = vmul.f32 %v1189_v8, %v422_v35  ;;  %v423_v37 = vmul.f32 %v1192_v12, %v422_v35  ;;  %v366_v35 = vstv %s807_s17 }
  0x51   : > { %481 = vrot.lane.b32.xlu1 %v477_v38, %s932_s15  ;;  %357 = vrot.lane.b32.xlu0 %v352_v39, %s932_s15  ;;  %v548_v38 = vstv %s841_s10 }
  0x52   : > { %v550_v39 = vmul.f32 %v1199_v15, %v548_v38  ;;  %v549_v40 = vmul.f32 %v1202_v18, %v548_v38 }
  0x55   : > { %607 = vrot.lane.b32.xlu1 %v603_v41, %s932_s15  ;;  %483 = vrot.lane.b32.xlu0 %v478_v42, %s932_s15  ;;  %v674_v41 = vstv %s866_s28 }
  0x56   : > { %v676_v42 = vmul.f32 %v1209_v22, %v674_v41  ;;  %v675_v44 = vmul.f32 %v1212_v26, %v674_v41  ;;  %v584_v41 = vstv %s1248_s18 }
  0x59   : > { %377 = vrot.lane.b32.xlu1 %v373_v45, %s933_s16  ;;  %609 = vrot.lane.b32.xlu0 %v604_v46, %s932_s15  ;;  %v207_v45 = vstv %s204_s11 }
  0x5a   : > { %v208_v46 = vmul.f32 %v207_v45, %v1062_v1  ;;  %v277_v1 = vstv %s795_s14 }
  0x5d   : > { %503 = vrot.lane.b32.xlu1 %v499_v50, %s933_s16  ;;  %379 = vrot.lane.b32.xlu0 %v374_v51, %s933_s16 }
  0x61   : > { %629 = vrot.lane.b32.xlu1 %v625_v55, %s933_s16  ;;  %505 = vrot.lane.b32.xlu0 %v500_v56, %s933_s16  ;;  %v209_v55 = vmul.f32 %v207_v45, %v1065_v2  ;;  %v242_v56 = vmul.f32 %v241_v48, %v1077_v11  ;;  %v278_v2 = vmul.f32 %v277_v1, %v1093_v19 }
  0x62   : > { %v279_v11 = vmul.f32 %v277_v1, %v1180_v5 }
  0x65   : > { %391 = vrot.lane.b32.xlu1 %v387_v59, %s932_s15  ;;  %631 = vrot.lane.b32.xlu0 %v626_v60, %s933_s16 }
  0x69   : > { %517 = vrot.lane.b32.xlu1 %v513_v62, %s932_s15  ;;  %393 = vrot.lane.b32.xlu0 %v388_v63, %s932_s15  ;;  %v243_v62 = vmul.f32 %v241_v48, %v1074_v9  ;;  %v585_v48 = vmul.f32 %v1113_v28, %v584_v41  ;;  %v586_v28 = vmul.f32 %v1123_v34, %v584_v41 }
  0x6d   : > { %643 = vrot.lane.b32.xlu1 %v639_v3, %s932_s15  ;;  %519 = vrot.lane.b32.xlu0 %v514_v4, %s932_s15 }
  0x71   : > { %290 = vrot.lane.b32.xlu1 %v285_v6, %s933_s16  ;;  %645 = vrot.lane.b32.xlu0 %v640_v7, %s932_s15 }
  0x75   : > { %415 = vrot.lane.b32.xlu1 %v410_v13, %s933_s16  ;;  %413 = vrot.lane.b32.xlu0 %v409_v14, %s933_s16 }
  0x79   : > { %541 = vrot.lane.b32.xlu1 %v536_v20, %s933_s16  ;;  %539 = vrot.lane.b32.xlu0 %v535_v21, %s933_s16 }
  0x7d   : > { %667 = vrot.lane.b32.xlu1 %v662_v27, %s933_s16  ;;  %665 = vrot.lane.b32.xlu0 %v661_v29, %s933_s16  ;;  %s827_s16 = sld [smem:[#allocation2 + $0x100]] }
  0x81   : > { %304 = vrot.lane.b32.xlu1 %v299_v32, %s932_s15  ;;  %302 = vrot.lane.b32.xlu0 %v298_v33, %s932_s15 }
  0x83   : > { %v458_v32 = vstv %s827_s16 }
  0x84   : > { %v459_v38 = vmul.f32 %v1103_v23, %v458_v32 }
  0x85   : > { %429 = vrot.lane.b32.xlu1 %v424_v36, %s932_s15  ;;  %427 = vrot.lane.b32.xlu0 %v423_v37, %s932_s15 }
  0x89   : > { %555 = vrot.lane.b32.xlu1 %v550_v39, %s932_s15  ;;  %553 = vrot.lane.b32.xlu0 %v549_v40, %s932_s15  ;;  %v367_v39 = vmul.f32 %v1138_v43, %v366_v35  ;;  %v618_v43 = vstv %s1253_s20 }
  0x8d   : > { %681 = vrot.lane.b32.xlu1 %v676_v42, %s932_s15  ;;  %679 = vrot.lane.b32.xlu0 %v675_v44, %s932_s15  ;;  %s802_s15 = sld [smem:[#allocation2 + $0x80]]  ;;  %v492_v44 = vstv %s1250_s19 }
  0x93   : > { %v332_v29 = vstv %s802_s15 }
  0x94   : > { %v333_v5 = vmul.f32 %v1090_v17, %v332_v29  ;;  %v334_v40 = vmul.f32 %v1106_v25, %v332_v29 }
  0xa3   : > { %v231_v50 = vpop.permute.xlu1 %230  ;;  %v217_v51 = vpop.permute.xlu0 %216 }
  0xa4   : > { %v222_v53 = vadd.f32 %v217_v51, %v208_v46  ;;  %v493_v51 = vmul.f32 %v1145_v47, %v492_v44  ;;  %v494_v47 = vmul.f32 %v1158_v54, %v492_v44 }
  0xa6   : > { %v236_v57 = vadd.f32 %v231_v50, %v222_v53 }
  0xa7   : > { %v233_v59 = vpop.permute.xlu1 %232  ;;  %v219_v60 = vpop.permute.xlu0 %218 }
  0xa8   : > { %v223_v61 = vadd.f32 %v219_v60, %v209_v55  ;;  %v244_v63 = vadd.f32 %v242_v56, %v236_v57  ;;  %v460_v55 = vmul.f32 %v1116_v30, %v458_v32  ;;  %v368_v56 = vmul.f32 %v1148_v49, %v366_v35 }
  0xaa   : > { %v237_v0 = vadd.f32 %v233_v59, %v223_v61 }
  0xab   : > { %v255_v3 = vpop.permute.xlu1 %254  ;;  %v253_v4 = vpop.permute.xlu0 %252 }
  0xac   : > { %v245_v6 = vadd.f32 %v243_v62, %v237_v0  ;;  %v258_v7 = vadd.f32 %v253_v4, %v244_v63  ;;  %v619_v62 = vmul.f32 %v1155_v52, %v618_v43 }
  0xae   : > { %v259_v10 = vadd.f32 %v255_v3, %v245_v6 }
  0xaf   : > { %v269_v13 = vpop.permute.xlu1 %268  ;;  %v267_v14 = vpop.permute.xlu0 %266 }
  0xb0   : > { %v273_v16 = vadd.f32 %v269_v13, %v259_v10  ;;  %v272_v20 = vadd.f32 %v267_v14, %v258_v7  ;;  %v620_v13 = vmul.f32 %v1165_v58, %v618_v43 }
  0xb2   : > { %v1242_v24 = vadd.f32 %v278_v2, %v272_v20  ;;  %v1244_v9 = vadd.f32 %v279_v11, %v273_v16  ;;  %v402_v20 = vstv %s812_s21 }
  0xb3   : > { %v342_v21 = vpop.permute.xlu1 %341  ;;  %v1246_v27 = vpop.permute.xlu0 %288  ;;  %v403_v29 = vmul.f32 %v1192_v12, %v402_v20 }
  0xb4   : > { %v347_v37 = vadd.f32 %v342_v21, %v333_v5 }
  0xb7   : > { %v468_v31 = vpop.permute.xlu1 %467  ;;  %v344_v19 = vpop.permute.xlu0 %343 }
  0xb8   : > { %v473_v17 = vadd.f32 %v468_v31, %v459_v38  ;;  %v348_v53 = vadd.f32 %v344_v19, %v334_v40  ;;  %v528_v19 = vstv %s837_s22  ;;  %v404_v38 = vmul.f32 %v1189_v8, %v402_v20 }
  0xb9   : > { %v529_v35 = vmul.f32 %v1202_v18, %v528_v19 }
  0xbb   : > { %v594_v33 = vpop.permute.xlu1 %593  ;;  %v470_v36 = vpop.permute.xlu0 %469 }
  0xbc   : > { %v599_v60 = vadd.f32 %v594_v33, %v585_v48  ;;  %v474_v63 = vadd.f32 %v470_v36, %v460_v55 }
  0xbf   : > { %v356_v42 = vpop.permute.xlu1 %355  ;;  %v596_v46 = vpop.permute.xlu0 %595 }
  0xc0   : > { %v361_v45 = vadd.f32 %v356_v42, %v347_v37  ;;  %v600_v49 = vadd.f32 %v596_v46, %v586_v28 }
  0xc2   : > { %v369_v50 = vadd.f32 %v367_v39, %v361_v45  ;;  %v654_v39 = vstv %s1269_s23 }
  0xc3   : > { %v482_v23 = vpop.permute.xlu1 %481  ;;  %v358_v25 = vpop.permute.xlu0 %357  ;;  %v655_v12 = vmul.f32 %v1212_v26, %v654_v39  ;;  %v656_v43 = vmul.f32 %v1209_v22, %v654_v39  ;;  %v314_v22 = vld [vmem:[%s1418_s3 + $0x8] sm:$0xff]  ;;  %v844_v39 = vld [vmem:[%s1418_s3 + $0x20] sm:$0xff] }
  0xc4   : > { %v487_v57 = vadd.f32 %v482_v23, %v473_v17  ;;  %v362_v59 = vadd.f32 %v358_v25, %v348_v53 }
  0xc6   : > { %v495_v61 = vadd.f32 %v493_v51, %v487_v57  ;;  %v370_v3 = vadd.f32 %v368_v56, %v362_v59 }
  0xc7   : > { %v608_v0 = vpop.permute.xlu1 %607  ;;  %v484_v30 = vpop.permute.xlu0 %483 }
  0xc8   : > { %v613_v4 = vadd.f32 %v608_v0, %v599_v60  ;;  %v488_v1 = vadd.f32 %v484_v30, %v474_v63  ;;  %v294_v0 = vadd.f32 %v1246_v27, %v1242_v24 }
  0xca   : > { %v621_v6 = vadd.f32 %v619_v62, %v613_v4  ;;  %v496_v10 = vadd.f32 %v494_v47, %v488_v1  ;;  %v313_v4 = vld [vmem:[%s1418_s3] sm:$0xff] }
  0xcb   : > { %v378_v7 = vpop.permute.xlu1 %377  ;;  %v610_v2 = vpop.permute.xlu0 %609 }
  0xcc   : > { %v614_v11 = vadd.f32 %v610_v2, %v600_v49  ;;  %v383_v21 = vadd.f32 %v378_v7, %v369_v50  ;;  %v530_v50 = vmul.f32 %v1199_v15, %v528_v19  ;;  %v798_v49 = vld [vmem:[%s1418_s3 + $0x40] sm:$0xff]  ;;  %v820_v2 = vld [vmem:[%s1418_s3 + $0x18] sm:$0xff] }
  0xce   : > { %v622_v14 = vadd.f32 %v620_v13, %v614_v11 }
  0xcf   : > { %v504_v52 = vpop.permute.xlu1 %503  ;;  %v380_v34 = vpop.permute.xlu0 %379 }
  0xd0   : > { %v509_v32 = vadd.f32 %v504_v52, %v495_v61  ;;  %v384_v36 = vadd.f32 %v380_v34, %v370_v3  ;;  %v819_v34 = vld [vmem:[%s1418_s3 + $0x10] sm:$0xff] }
  0xd3   : > { %v630_v16 = vpop.permute.xlu1 %629  ;;  %v506_v54 = vpop.permute.xlu0 %505 }
  0xd4   : > { %v635_v44 = vadd.f32 %v630_v16, %v621_v6  ;;  %v510_v46 = vadd.f32 %v506_v54, %v496_v10  ;;  %v824_v54 = vld [vmem:[%s1418_s3 + $0x58] sm:$0xff] }
  0xd7   : > { %v392_v31 = vpop.permute.xlu1 %391  ;;  %v632_v58 = vpop.permute.xlu0 %631 }
  0xd8   : > { %v397_v5 = vadd.f32 %v392_v31, %v383_v21  ;;  %v636_v23 = vadd.f32 %v632_v58, %v622_v14 }
  0xda   : > { %v405_v33 = vadd.f32 %v403_v29, %v397_v5  ;;  %v823_v5 = vld [vmem:[%s1418_s3 + $0x50] sm:$0xff] }
  0xdb   : > { %v518_v37 = vpop.permute.xlu1 %517  ;;  %v394_v41 = vpop.permute.xlu0 %393 }
  0xdc   : > { %v523_v40 = vadd.f32 %v518_v37, %v509_v32  ;;  %v398_v42 = vadd.f32 %v394_v41, %v384_v36 }
  0xde   : > { %v531_v45 = vadd.f32 %v529_v35, %v523_v40  ;;  %v406_v48 = vadd.f32 %v404_v38, %v398_v42  ;;  %v845_v35 = vld [vmem:[%s1418_s3 + $0x28] sm:$0xff] }
  0xdf   : > { %v644_v17 = vpop.permute.xlu1 %643  ;;  %v520_v53 = vpop.permute.xlu0 %519  ;;  %v849_v42 = vld [vmem:[%s1418_s3 + $0x68] sm:$0xff] }
  0xe0   : > { %v649_v51 = vadd.f32 %v644_v17, %v635_v44  ;;  %v524_v18 = vadd.f32 %v520_v53, %v510_v46  ;;  %v848_v17 = vld [vmem:[%s1418_s3 + $0x60] sm:$0xff]  ;;  %v870_v53 = vld [vmem:[%s1418_s3 + $0x38] sm:$0xff] }
  0xe2   : > { %v1277_v55 = vadd.f32 %v655_v12, %v649_v51  ;;  %v532_v56 = vadd.f32 %v530_v50, %v524_v18 }
  0xe3   : > { %v291_v8 = vpop.permute.xlu1 %290  ;;  %v646_v57 = vpop.permute.xlu0 %645 }
  0xe4   : > { %v650_v25 = vadd.f32 %v646_v57, %v636_v23  ;;  %v295_v28 = vadd.f32 %v291_v8, %v1244_v9  ;;  %v799_v9 = vld [vmem:[%s1418_s3 + $0x48] sm:$0xff]  ;;  %v869_v8 = vld [vmem:[%s1418_s3 + $0x30] sm:$0xff]  ;;  %v874_v57 = vld [vmem:[%s1418_s3 + $0x78] sm:$0xff] }
  0xe6   : > { %v658_v60 = vadd.f32 %v656_v43, %v650_v25 }
  0xe7   : > { %v416_v59 = vpop.permute.xlu1 %415  ;;  %v414_v26 = vpop.permute.xlu0 %413 }
  0xe8   : > { %v420_v6 = vadd.f32 %v416_v59, %v406_v48  ;;  %v419_v7 = vadd.f32 %v414_v26, %v405_v33  ;;  %v873_v26 = vld [vmem:[%s1418_s3 + $0x70] sm:$0xff] }
  0xeb   : > { %v542_v61 = vpop.permute.xlu1 %541  ;;  %v540_v62 = vpop.permute.xlu0 %539 }
  0xec   : > { %v546_v29 = vadd.f32 %v542_v61, %v532_v56  ;;  %v545_v58 = vadd.f32 %v540_v62, %v531_v45 }
  0xef   : > { %v668_v63 = vpop.permute.xlu1 %667  ;;  %v666_v15 = vpop.permute.xlu0 %665 }
  0xf0   : > { %v672_v45 = vadd.f32 %v668_v63, %v658_v60  ;;  %v671_v48 = vadd.f32 %v666_v15, %v1277_v55 }
  0xf3   : > { %v305_v3 = vpop.permute.xlu1 %304  ;;  %v303_v30 = vpop.permute.xlu0 %302 }
  0xf4   : > { %v309_v47 = vadd.f32 %v305_v3, %v295_v28  ;;  %v308_v1 = vadd.f32 %v303_v30, %v294_v0 }
  0xf6   : > { %312 = vst.msk [vmem:[%s988_s25 + $0x8] sm:$0xff] %vm310_vm1, %v309_v47  ;;  %v316_v24 = vadd.f32 %v314_v22, %v309_v47  ;;  %v323_v27 = vmul.f32 %v309_v47, %v309_v47  ;;  %311 = vst.msk [vmem:[%s988_s25] sm:$0xff] %vm310_vm1, %v308_v1  ;;  %v315_v10 = vadd.f32 %v313_v4, %v308_v1 }
  0xf7   : > { %v322_v13 = vmul.f32 %v308_v1, %v308_v1  ;;  %v430_v11 = vpop.permute.xlu1 %429  ;;  %v428_v16 = vpop.permute.xlu0 %427 }
  0xf8   : > { %318 = vst.msk [vmem:[%s1418_s3 + $0x8] sm:$0xff] %vm310_vm1, %v316_v24  ;;  %v325_v52 = vadd.f32 %v799_v9, %v323_v27  ;;  %v434_v14 = vadd.f32 %v430_v11, %v420_v6  ;;  %317 = vst.msk [vmem:[%s1418_s3] sm:$0xff] %vm310_vm1, %v315_v10  ;;  %v433_v21 = vadd.f32 %v428_v16, %v419_v7 }
  0xf9   : > { %v324_v20 = vadd.f32 %v798_v49, %v322_v13 }
  0xfa   : > { %801 = vst.msk [vmem:[%s1418_s3 + $0x48] sm:$0xff] %vm310_vm1, %v325_v52  ;;  %818 = vst.msk [vmem:[%s988_s25 + $0x18] sm:$0xff] %vm310_vm1, %v434_v14  ;;  %v442_v31 = vadd.f32 %v820_v2, %v434_v14  ;;  %v449_v19 = vmul.f32 %v434_v14, %v434_v14  ;;  %v441_v32 = vadd.f32 %v819_v34, %v433_v21 }
  0xfb   : > { %800 = vst.msk [vmem:[%s1418_s3 + $0x40] sm:$0xff] %vm310_vm1, %v324_v20  ;;  %817 = vst.msk [vmem:[%s988_s25 + $0x10] sm:$0xff] %vm310_vm1, %v433_v21  ;;  %v448_v33 = vmul.f32 %v433_v21, %v433_v21  ;;  %v556_v36 = vpop.permute.xlu1 %555  ;;  %v554_v40 = vpop.permute.xlu0 %553 }
  0xfc   : > { %822 = vst.msk [vmem:[%s1418_s3 + $0x18] sm:$0xff] %vm310_vm1, %v442_v31  ;;  %v451_v37 = vadd.f32 %v824_v54, %v449_v19  ;;  %v560_v38 = vadd.f32 %v556_v36, %v546_v29  ;;  %821 = vst.msk [vmem:[%s1418_s3 + $0x10] sm:$0xff] %vm310_vm1, %v441_v32  ;;  %v559_v44 = vadd.f32 %v554_v40, %v545_v58 }
  0xfd   : > { %v450_v41 = vadd.f32 %v823_v5, %v448_v33 }
  0xfe   : > { %826 = vst.msk [vmem:[%s1418_s3 + $0x58] sm:$0xff] %vm310_vm1, %v451_v37  ;;  %843 = vst.msk [vmem:[%s988_s25 + $0x28] sm:$0xff] %vm310_vm1, %v560_v38  ;;  %v568_v12 = vadd.f32 %v845_v35, %v560_v38  ;;  %v575_v46 = vmul.f32 %v560_v38, %v560_v38  ;;  %v567_v50 = vadd.f32 %v844_v39, %v559_v44 }
  0xff   : > { %825 = vst.msk [vmem:[%s1418_s3 + $0x50] sm:$0xff] %vm310_vm1, %v450_v41  ;;  %842 = vst.msk [vmem:[%s988_s25 + $0x20] sm:$0xff] %vm310_vm1, %v559_v44  ;;  %v574_v51 = vmul.f32 %v559_v44, %v559_v44  ;;  %v682_v18 = vpop.permute.xlu1 %681  ;;  %v680_v56 = vpop.permute.xlu0 %679 }
 0x100   : > { %847 = vst.msk [vmem:[%s1418_s3 + $0x28] sm:$0xff] %vm310_vm1, %v568_v12  ;;  %v577_v55 = vadd.f32 %v849_v42, %v575_v46  ;;  %v686_v23 = vadd.f32 %v682_v18, %v672_v45  ;;  %846 = vst.msk [vmem:[%s1418_s3 + $0x20] sm:$0xff] %vm310_vm1, %v567_v50  ;;  %v685_v25 = vadd.f32 %v680_v56, %v671_v48 }
 0x101   : > { %v576_v43 = vadd.f32 %v848_v17, %v574_v51 }
 0x102   : > { %851 = vst.msk [vmem:[%s1418_s3 + $0x68] sm:$0xff] %vm310_vm1, %v577_v55  ;;  %868 = vst.msk [vmem:[%s988_s25 + $0x38] sm:$0xff] %vm310_vm1, %v686_v23  ;;  %v694_v59 = vadd.f32 %v870_v53, %v686_v23  ;;  %v701_v60 = vmul.f32 %v686_v23, %v686_v23  ;;  %v693_v61 = vadd.f32 %v869_v8, %v685_v25 }
 0x103   : > { %850 = vst.msk [vmem:[%s1418_s3 + $0x60] sm:$0xff] %vm310_vm1, %v576_v43  ;;  %867 = vst.msk [vmem:[%s988_s25 + $0x30] sm:$0xff] %vm310_vm1, %v685_v25  ;;  %v700_v62 = vmul.f32 %v685_v25, %v685_v25 }
 0x104   : > { %872 = vst.msk [vmem:[%s1418_s3 + $0x38] sm:$0xff] %vm310_vm1, %v694_v59  ;;  %v703_v63 = vadd.f32 %v874_v57, %v701_v60  ;;  %871 = vst.msk [vmem:[%s1418_s3 + $0x30] sm:$0xff] %vm310_vm1, %v693_v61 }
 0x105   : > { %v702_v15 = vadd.f32 %v873_v26, %v700_v62 }
 0x106   : > { %876 = vst.msk [vmem:[%s1418_s3 + $0x78] sm:$0xff] %vm310_vm1, %v703_v63 }
 0x107   : > { %875 = vst.msk [vmem:[%s1418_s3 + $0x70] sm:$0xff] %vm310_vm1, %v702_v15 }
 0x108 PF: > { %s15_s12 = sadd.s32 1, %s928_s12  }
 0x109   : > { %p12_p2 = scmp.ge.s32.totalorder %s15_s12, 4  }
 0x10b   :  { %14 = sbr.rel (!%p12_p2) target bundleno = 1 (0x1), region = 88 }
 0x112   :  { %733 = vsyncpa [#allocation3], 1 }
 0x113   :  { %735 = vsyncpa [#allocation3 + $0x1], 1 }

</bundles_post_ra>
